<compile_context>
chip_gen: v7x
topology: tpu7x:2x2x1
jax: 0.10.0
libtpu: 0.0.40
codegen_flags: <defaults>
</compile_context>

<pallas_src>
import jax
import jax.numpy as jnp
from jax.experimental import pallas as pl
from jax.experimental.pallas import tpu as pltpu


def rnn_block_kernel(ids_ref,                       # (T*Bp,) int32  scalar-prefetch (SMEM)
                     wih_ref, whh_ref, b_ref,       # (V,H), (H,H), (1,H)   VMEM
                     wd_ref, bd_ref, h0_ref,        # (H,V), (1,V), (Bp,H)  VMEM
                     out_ref, hT_ref,               # (TB*Bp,V), (Bp,H)     VMEM outputs
                     buf_ref, h_scratch):           # (TB*Bp,H), (Bp,H)     VMEM scratch
    """One grid step == one time-block of TB timesteps (sequential grid axis)."""
    i = pl.program_id(0)
    Bp, H = h_scratch.shape
    TB = buf_ref.shape[0] // Bp
    base = i * (TB * Bp)

    # Initialize the hidden-state carry on the first time block.
    @pl.when(i == 0)
    def _():
        h_scratch[...] = h0_ref[...]

    # ---- Embedding-style gather: x_t contribution == row of W_ih^T per token ----
    # (replaces the one-hot matmul; W_ih^T stays VMEM-resident, ids live in SMEM)
    for r in range(TB * Bp):
        tok = ids_ref[base + r]
        buf_ref[pl.ds(r, 1), :] = wih_ref[pl.ds(tok, 1), :]

    # ---- Recurrence over the time block; h carried in VMEM scratch across blocks ----
    h = h_scratch[...]
    for t in range(TB):
        xt = buf_ref[pl.ds(t * Bp, Bp), :]               # gathered W_ih^T rows
        h = jnp.tanh(
            xt
            + jnp.dot(h, whh_ref[...], preferred_element_type=jnp.float32)
            + b_ref[...]                                  # b_ih + b_hh
        )
        buf_ref[pl.ds(t * Bp, Bp), :] = h                 # Y accumulated in place
    h_scratch[...] = h
    hT_ref[...] = h.astype(hT_ref.dtype)

    # ---- Hoisted dense projection: one lane-dense (TB*Bp,H)@(H,V) matmul ----
    out_ref[...] = (
        jnp.dot(buf_ref[...], wd_ref[...], preferred_element_type=jnp.float32)
        + bd_ref[...]
    ).astype(out_ref.dtype)


def rnn_model_forward(inputs, state, params, vocab_size, *, time_block=None):
    """inputs: (batch, seq_len) int32 token ids.  state: (1, batch, hidden) f32.

    Returns (output, new_state): output (seq_len*batch, vocab_size),
    new_state (1, batch, hidden) — same as the PyTorch module.
    """
    wih_t, whh_t, b_sum, wd_t, bd = params           # pre-transposed weights
    B, T = inputs.shape
    H = wih_t.shape[1]
    V = vocab_size

    Bp = max(8, ((B + 7) // 8) * 8)                  # pad batch to sublane multiple
    TB = T if time_block is None else time_block
    assert T % TB == 0, "seq_len must be divisible by the time block"
    n_blocks = T // TB

    # Glue: time-major padded token ids (flattened for SMEM scalar prefetch) and
    # padded initial hidden state.  Padded rows compute dummy values, sliced off below.
    ids = jnp.zeros((T, Bp), jnp.int32).at[:, :B].set(inputs.T.astype(jnp.int32))
    ids_flat = ids.reshape(T * Bp)
    h0 = jnp.zeros((Bp, H), jnp.float32).at[:B, :].set(state[0])

    grid_spec = pltpu.PrefetchScalarGridSpec(
        num_scalar_prefetch=1,                       # token ids -> SMEM
        grid=(n_blocks,),
        in_specs=[
            pl.BlockSpec((V, H), lambda i, ids: (0, 0)),      # W_ih^T (resident)
            pl.BlockSpec((H, H), lambda i, ids: (0, 0)),      # W_hh^T (resident)
            pl.BlockSpec((1, H), lambda i, ids: (0, 0)),      # b_ih + b_hh
            pl.BlockSpec((H, V), lambda i, ids: (0, 0)),      # W_dense^T (resident)
            pl.BlockSpec((1, V), lambda i, ids: (0, 0)),      # b_dense
            pl.BlockSpec((Bp, H), lambda i, ids: (0, 0)),     # h0
        ],
        out_specs=[
            pl.BlockSpec((TB * Bp, V), lambda i, ids: (i, 0)),  # dense output slab
            pl.BlockSpec((Bp, H), lambda i, ids: (0, 0)),       # final hidden state
        ],
        scratch_shapes=[
            pltpu.VMEM((TB * Bp, H), jnp.float32),   # gathered x rows -> Y buffer
            pltpu.VMEM((Bp, H), jnp.float32),        # hidden-state carry
        ],
    )

    out_pad, hT = pl.pallas_call(
        rnn_block_kernel,
        out_shape=(
            jax.ShapeDtypeStruct((T * Bp, V), jnp.float32),
            jax.ShapeDtypeStruct((Bp, H), jnp.float32),
        ),
        grid_spec=grid_spec,
        compiler_params=pltpu.CompilerParams(
            dimension_semantics=("arbitrary",),      # recurrence: sequential blocks
        ),
    )(ids_flat, wih_t, whh_t, b_sum, wd_t, bd, h0)

    # Drop batch padding; row order matches PyTorch's Y.view(-1, H) (time-major).
    output = out_pad.reshape(T, Bp, V)[:, :B, :].reshape(T * B, V)
    new_state = hT[:B][None, :, :]                   # (1, B, H), like nn.RNN's h_n
    return output, new_state


def reference_forward(inputs, state, params, vocab_size):
    """Pure-JAX reference (mirrors the PyTorch math) for correctness check."""
    wih_t, whh_t, b_sum, wd_t, bd = params
    x_emb = wih_t[inputs.T]                          # (T, B, H) == one_hot @ W_ih^T
    h = state[0]

    def step(h, x):
        h = jnp.tanh(x + h @ whh_t + b_sum)
        return h, h

    hT, Y = jax.lax.scan(step, h, x_emb)
    out = Y.reshape(-1, Y.shape[-1]) @ wd_t + bd
    return out, hT[None, :, :]


if __name__ == "__main__":
    # Small shapes consistent with the module's forward.
    BATCH, SEQ, VOCAB, HIDDEN = 4, 8, 128, 128

    key = jax.random.PRNGKey(0)
    k_tok, k1, k2, k3, k4, k5, k6, k7 = jax.random.split(key, 8)

    # Deterministic parameter init (uniform(-1/sqrt(H), 1/sqrt(H)), like PyTorch).
    s = 1.0 / jnp.sqrt(jnp.float32(HIDDEN))
    w_ih = jax.random.uniform(k1, (HIDDEN, VOCAB), jnp.float32, -s, s)   # torch (out, in)
    w_hh = jax.random.uniform(k2, (HIDDEN, HIDDEN), jnp.float32, -s, s)
    b_ih = jax.random.uniform(k3, (HIDDEN,), jnp.float32, -s, s)
    b_hh = jax.random.uniform(k4, (HIDDEN,), jnp.float32, -s, s)
    w_d = jax.random.uniform(k5, (VOCAB, HIDDEN), jnp.float32, -s, s)    # nn.Linear(H, V)
    b_d = jax.random.uniform(k6, (VOCAB,), jnp.float32, -s, s)

    # Pre-transpose for the kernel: (in, out) so it can do x @ W.
    params = (
        w_ih.T,                                  # (V, H)
        w_hh.T,                                  # (H, H)
        (b_ih + b_hh)[None, :],                  # (1, H)
        w_d.T,                                   # (H, V)
        b_d[None, :],                            # (1, V)
    )

    inputs = jax.random.randint(k_tok, (BATCH, SEQ), 0, VOCAB, dtype=jnp.int32)
    state = jax.random.normal(k7, (1, BATCH, HIDDEN), jnp.float32)

    out, new_state = rnn_model_forward(inputs, state, params, VOCAB)
    out = jax.block_until_ready(out)
    new_state = jax.block_until_ready(new_state)

    out_ref, state_ref = reference_forward(inputs, state, params, VOCAB)
    assert out.shape == (SEQ * BATCH, VOCAB)
    assert new_state.shape == (1, BATCH, HIDDEN)
    assert jnp.allclose(out, out_ref, atol=1e-4, rtol=1e-4)
    assert jnp.allclose(new_state, state_ref, atol=1e-4, rtol=1e-4)

    # TODO(synk): multi-layer / bidirectional nn.RNN variants and bf16-weight /
    # V-tiled variants for very large vocab (v7x 64 MiB VMEM) are not covered;
    # this implements the standard single-layer unidirectional tanh RNN in f32.
    print("KERNEL_OK")
</pallas_src>

<mosaic_0001>
module attributes {stable_mosaic.version = 11 : i64} {
  func.func @rnn_block_kernel(%arg0: i32, %arg1: memref<64xi32, #tpu.memory_space<smem>>, %arg2: memref<128x128xf32, #tpu.memory_space<vmem>>, %arg3: memref<128x128xf32, #tpu.memory_space<vmem>>, %arg4: memref<1x128xf32, #tpu.memory_space<vmem>>, %arg5: memref<128x128xf32, #tpu.memory_space<vmem>>, %arg6: memref<1x128xf32, #tpu.memory_space<vmem>>, %arg7: memref<8x128xf32, #tpu.memory_space<vmem>>, %arg8: memref<64x128xf32, #tpu.memory_space<vmem>>, %arg9: memref<8x128xf32, #tpu.memory_space<vmem>>, %arg10: memref<64x128xf32, #tpu.memory_space<vmem>>, %arg11: memref<8x128xf32, #tpu.memory_space<vmem>>) attributes {dimension_semantics = [#tpu.dimension_semantics<arbitrary>], iteration_bounds = array<i64: 1>, scalar_prefetch = 1 : i64, scratch_operands = 2 : i64, tpu.core_type = #tpu.core_type<tc>, window_params = [{pipeline_mode = #tpu.pipeline_mode<synchronous>, transform_indices = @transform_0, window_bounds = array<i64: 128, 128>}, {pipeline_mode = #tpu.pipeline_mode<synchronous>, transform_indices = @transform_1, window_bounds = array<i64: 128, 128>}, {pipeline_mode = #tpu.pipeline_mode<synchronous>, transform_indices = @transform_2, window_bounds = array<i64: 1, 128>}, {pipeline_mode = #tpu.pipeline_mode<synchronous>, transform_indices = @transform_3, window_bounds = array<i64: 128, 128>}, {pipeline_mode = #tpu.pipeline_mode<synchronous>, transform_indices = @transform_4, window_bounds = array<i64: 1, 128>}, {pipeline_mode = #tpu.pipeline_mode<synchronous>, transform_indices = @transform_5, window_bounds = array<i64: 8, 128>}, {transform_indices = @transform_6, window_bounds = array<i64: 64, 128>}, {pipeline_mode = #tpu.pipeline_mode<synchronous>, transform_indices = @transform_7, window_bounds = array<i64: 8, 128>}]} {
    %c64_i32 = arith.constant 64 : i32
    %0 = arith.muli %arg0, %c64_i32 : i32
    %c0_i32 = arith.constant 0 : i32
    %1 = arith.cmpi eq, %arg0, %c0_i32 : i32
    %2 = arith.extui %1 : i1 to i32
    %c0_i32_0 = arith.constant 0 : i32
    %3 = arith.cmpi ne, %2, %c0_i32_0 : i32
    scf.if %3 {
      %c0_216 = arith.constant 0 : index
      %c0_217 = arith.constant 0 : index
      %470 = vector.load %arg7[%c0_216, %c0_217] : memref<8x128xf32, #tpu.memory_space<vmem>>, vector<8x128xf32>
      %c0_218 = arith.constant 0 : index
      %c0_219 = arith.constant 0 : index
      %471 = vector.load %arg11[%c0_218, %c0_219] : memref<8x128xf32, #tpu.memory_space<vmem>>, vector<8x128xf32>
      tpu.vector_store %arg11[%c0_218, %c0_219], %470 {strides = array<i32>} : memref<8x128xf32, #tpu.memory_space<vmem>>, vector<8x128xf32>,
    } else {
    }
    %c0_i32_1 = arith.constant 0 : i32
    %4 = arith.addi %0, %c0_i32_1 : i32
    %5 = arith.index_cast %4 : i32 to index
    %6 = memref.load %arg1[%5] : memref<64xi32, #tpu.memory_space<smem>>
    %7 = arith.index_cast %6 : i32 to index
    %c0 = arith.constant 0 : index
    %8 = vector.load %arg2[%7, %c0] : memref<128x128xf32, #tpu.memory_space<vmem>>, vector<1x128xf32>
    %c0_2 = arith.constant 0 : index
    %c0_3 = arith.constant 0 : index
    %9 = vector.load %arg10[%c0_2, %c0_3] : memref<64x128xf32, #tpu.memory_space<vmem>>, vector<1x128xf32>
    tpu.vector_store %arg10[%c0_2, %c0_3], %8 {strides = array<i32>} : memref<64x128xf32, #tpu.memory_space<vmem>>, vector<1x128xf32>,
    %c1_i32 = arith.constant 1 : i32
    %10 = arith.addi %0, %c1_i32 : i32
    %11 = arith.index_cast %10 : i32 to index
    %12 = memref.load %arg1[%11] : memref<64xi32, #tpu.memory_space<smem>>
    %13 = arith.index_cast %12 : i32 to index
    %c0_4 = arith.constant 0 : index
    %14 = vector.load %arg2[%13, %c0_4] : memref<128x128xf32, #tpu.memory_space<vmem>>, vector<1x128xf32>
    %c1 = arith.constant 1 : index
    %c0_5 = arith.constant 0 : index
    %15 = vector.load %arg10[%c1, %c0_5] : memref<64x128xf32, #tpu.memory_space<vmem>>, vector<1x128xf32>
    tpu.vector_store %arg10[%c1, %c0_5], %14 {strides = array<i32>} : memref<64x128xf32, #tpu.memory_space<vmem>>, vector<1x128xf32>,
    %c2_i32 = arith.constant 2 : i32
    %16 = arith.addi %0, %c2_i32 : i32
    %17 = arith.index_cast %16 : i32 to index
    %18 = memref.load %arg1[%17] : memref<64xi32, #tpu.memory_space<smem>>
    %19 = arith.index_cast %18 : i32 to index
    %c0_6 = arith.constant 0 : index
    %20 = vector.load %arg2[%19, %c0_6] : memref<128x128xf32, #tpu.memory_space<vmem>>, vector<1x128xf32>
    %c2 = arith.constant 2 : index
    %c0_7 = arith.constant 0 : index
    %21 = vector.load %arg10[%c2, %c0_7] : memref<64x128xf32, #tpu.memory_space<vmem>>, vector<1x128xf32>
    tpu.vector_store %arg10[%c2, %c0_7], %20 {strides = array<i32>} : memref<64x128xf32, #tpu.memory_space<vmem>>, vector<1x128xf32>,
    %c3_i32 = arith.constant 3 : i32
    %22 = arith.addi %0, %c3_i32 : i32
    %23 = arith.index_cast %22 : i32 to index
    %24 = memref.load %arg1[%23] : memref<64xi32, #tpu.memory_space<smem>>
    %25 = arith.index_cast %24 : i32 to index
    %c0_8 = arith.constant 0 : index
    %26 = vector.load %arg2[%25, %c0_8] : memref<128x128xf32, #tpu.memory_space<vmem>>, vector<1x128xf32>
    %c3 = arith.constant 3 : index
    %c0_9 = arith.constant 0 : index
    %27 = vector.load %arg10[%c3, %c0_9] : memref<64x128xf32, #tpu.memory_space<vmem>>, vector<1x128xf32>
    tpu.vector_store %arg10[%c3, %c0_9], %26 {strides = array<i32>} : memref<64x128xf32, #tpu.memory_space<vmem>>, vector<1x128xf32>,
    %c4_i32 = arith.constant 4 : i32
    %28 = arith.addi %0, %c4_i32 : i32
    %29 = arith.index_cast %28 : i32 to index
    %30 = memref.load %arg1[%29] : memref<64xi32, #tpu.memory_space<smem>>
    %31 = arith.index_cast %30 : i32 to index
    %c0_10 = arith.constant 0 : index
    %32 = vector.load %arg2[%31, %c0_10] : memref<128x128xf32, #tpu.memory_space<vmem>>, vector<1x128xf32>
    %c4 = arith.constant 4 : index
    %c0_11 = arith.constant 0 : index
    %33 = vector.load %arg10[%c4, %c0_11] : memref<64x128xf32, #tpu.memory_space<vmem>>, vector<1x128xf32>
    tpu.vector_store %arg10[%c4, %c0_11], %32 {strides = array<i32>} : memref<64x128xf32, #tpu.memory_space<vmem>>, vector<1x128xf32>,
    %c5_i32 = arith.constant 5 : i32
    %34 = arith.addi %0, %c5_i32 : i32
    %35 = arith.index_cast %34 : i32 to index
    %36 = memref.load %arg1[%35] : memref<64xi32, #tpu.memory_space<smem>>
    %37 = arith.index_cast %36 : i32 to index
    %c0_12 = arith.constant 0 : index
    %38 = vector.load %arg2[%37, %c0_12] : memref<128x128xf32, #tpu.memory_space<vmem>>, vector<1x128xf32>
    %c5 = arith.constant 5 : index
    %c0_13 = arith.constant 0 : index
    %39 = vector.load %arg10[%c5, %c0_13] : memref<64x128xf32, #tpu.memory_space<vmem>>, vector<1x128xf32>
    tpu.vector_store %arg10[%c5, %c0_13], %38 {strides = array<i32>} : memref<64x128xf32, #tpu.memory_space<vmem>>, vector<1x128xf32>,
    %c6_i32 = arith.constant 6 : i32
    %40 = arith.addi %0, %c6_i32 : i32
    %41 = arith.index_cast %40 : i32 to index
    %42 = memref.load %arg1[%41] : memref<64xi32, #tpu.memory_space<smem>>
    %43 = arith.index_cast %42 : i32 to index
    %c0_14 = arith.constant 0 : index
    %44 = vector.load %arg2[%43, %c0_14] : memref<128x128xf32, #tpu.memory_space<vmem>>, vector<1x128xf32>
    %c6 = arith.constant 6 : index
    %c0_15 = arith.constant 0 : index
    %45 = vector.load %arg10[%c6, %c0_15] : memref<64x128xf32, #tpu.memory_space<vmem>>, vector<1x128xf32>
    tpu.vector_store %arg10[%c6, %c0_15], %44 {strides = array<i32>} : memref<64x128xf32, #tpu.memory_space<vmem>>, vector<1x128xf32>,
    %c7_i32 = arith.constant 7 : i32
    %46 = arith.addi %0, %c7_i32 : i32
    %47 = arith.index_cast %46 : i32 to index
    %48 = memref.load %arg1[%47] : memref<64xi32, #tpu.memory_space<smem>>
    %49 = arith.index_cast %48 : i32 to index
    %c0_16 = arith.constant 0 : index
    %50 = vector.load %arg2[%49, %c0_16] : memref<128x128xf32, #tpu.memory_space<vmem>>, vector<1x128xf32>
    %c7 = arith.constant 7 : index
    %c0_17 = arith.constant 0 : index
    %51 = vector.load %arg10[%c7, %c0_17] : memref<64x128xf32, #tpu.memory_space<vmem>>, vector<1x128xf32>
    tpu.vector_store %arg10[%c7, %c0_17], %50 {strides = array<i32>} : memref<64x128xf32, #tpu.memory_space<vmem>>, vector<1x128xf32>,
    %c8_i32 = arith.constant 8 : i32
    %52 = arith.addi %0, %c8_i32 : i32
    %53 = arith.index_cast %52 : i32 to index
    %54 = memref.load %arg1[%53] : memref<64xi32, #tpu.memory_space<smem>>
    %55 = arith.index_cast %54 : i32 to index
    %c0_18 = arith.constant 0 : index
    %56 = vector.load %arg2[%55, %c0_18] : memref<128x128xf32, #tpu.memory_space<vmem>>, vector<1x128xf32>
    %c8 = arith.constant 8 : index
    %c0_19 = arith.constant 0 : index
    %57 = vector.load %arg10[%c8, %c0_19] : memref<64x128xf32, #tpu.memory_space<vmem>>, vector<1x128xf32>
    tpu.vector_store %arg10[%c8, %c0_19], %56 {strides = array<i32>} : memref<64x128xf32, #tpu.memory_space<vmem>>, vector<1x128xf32>,
    %c9_i32 = arith.constant 9 : i32
    %58 = arith.addi %0, %c9_i32 : i32
    %59 = arith.index_cast %58 : i32 to index
    %60 = memref.load %arg1[%59] : memref<64xi32, #tpu.memory_space<smem>>
    %61 = arith.index_cast %60 : i32 to index
    %c0_20 = arith.constant 0 : index
    %62 = vector.load %arg2[%61, %c0_20] : memref<128x128xf32, #tpu.memory_space<vmem>>, vector<1x128xf32>
    %c9 = arith.constant 9 : index
    %c0_21 = arith.constant 0 : index
    %63 = vector.load %arg10[%c9, %c0_21] : memref<64x128xf32, #tpu.memory_space<vmem>>, vector<1x128xf32>
    tpu.vector_store %arg10[%c9, %c0_21], %62 {strides = array<i32>} : memref<64x128xf32, #tpu.memory_space<vmem>>, vector<1x128xf32>,
    %c10_i32 = arith.constant 10 : i32
    %64 = arith.addi %0, %c10_i32 : i32
    %65 = arith.index_cast %64 : i32 to index
    %66 = memref.load %arg1[%65] : memref<64xi32, #tpu.memory_space<smem>>
    %67 = arith.index_cast %66 : i32 to index
    %c0_22 = arith.constant 0 : index
    %68 = vector.load %arg2[%67, %c0_22] : memref<128x128xf32, #tpu.memory_space<vmem>>, vector<1x128xf32>
    %c10 = arith.constant 10 : index
    %c0_23 = arith.constant 0 : index
    %69 = vector.load %arg10[%c10, %c0_23] : memref<64x128xf32, #tpu.memory_space<vmem>>, vector<1x128xf32>
    tpu.vector_store %arg10[%c10, %c0_23], %68 {strides = array<i32>} : memref<64x128xf32, #tpu.memory_space<vmem>>, vector<1x128xf32>,
    %c11_i32 = arith.constant 11 : i32
    %70 = arith.addi %0, %c11_i32 : i32
    %71 = arith.index_cast %70 : i32 to index
    %72 = memref.load %arg1[%71] : memref<64xi32, #tpu.memory_space<smem>>
    %73 = arith.index_cast %72 : i32 to index
    %c0_24 = arith.constant 0 : index
    %74 = vector.load %arg2[%73, %c0_24] : memref<128x128xf32, #tpu.memory_space<vmem>>, vector<1x128xf32>
    %c11 = arith.constant 11 : index
    %c0_25 = arith.constant 0 : index
    %75 = vector.load %arg10[%c11, %c0_25] : memref<64x128xf32, #tpu.memory_space<vmem>>, vector<1x128xf32>
    tpu.vector_store %arg10[%c11, %c0_25], %74 {strides = array<i32>} : memref<64x128xf32, #tpu.memory_space<vmem>>, vector<1x128xf32>,
    %c12_i32 = arith.constant 12 : i32
    %76 = arith.addi %0, %c12_i32 : i32
    %77 = arith.index_cast %76 : i32 to index
    %78 = memref.load %arg1[%77] : memref<64xi32, #tpu.memory_space<smem>>
    %79 = arith.index_cast %78 : i32 to index
    %c0_26 = arith.constant 0 : index
    %80 = vector.load %arg2[%79, %c0_26] : memref<128x128xf32, #tpu.memory_space<vmem>>, vector<1x128xf32>
    %c12 = arith.constant 12 : index
    %c0_27 = arith.constant 0 : index
    %81 = vector.load %arg10[%c12, %c0_27] : memref<64x128xf32, #tpu.memory_space<vmem>>, vector<1x128xf32>
    tpu.vector_store %arg10[%c12, %c0_27], %80 {strides = array<i32>} : memref<64x128xf32, #tpu.memory_space<vmem>>, vector<1x128xf32>,
    %c13_i32 = arith.constant 13 : i32
    %82 = arith.addi %0, %c13_i32 : i32
    %83 = arith.index_cast %82 : i32 to index
    %84 = memref.load %arg1[%83] : memref<64xi32, #tpu.memory_space<smem>>
    %85 = arith.index_cast %84 : i32 to index
    %c0_28 = arith.constant 0 : index
    %86 = vector.load %arg2[%85, %c0_28] : memref<128x128xf32, #tpu.memory_space<vmem>>, vector<1x128xf32>
    %c13 = arith.constant 13 : index
    %c0_29 = arith.constant 0 : index
    %87 = vector.load %arg10[%c13, %c0_29] : memref<64x128xf32, #tpu.memory_space<vmem>>, vector<1x128xf32>
    tpu.vector_store %arg10[%c13, %c0_29], %86 {strides = array<i32>} : memref<64x128xf32, #tpu.memory_space<vmem>>, vector<1x128xf32>,
    %c14_i32 = arith.constant 14 : i32
    %88 = arith.addi %0, %c14_i32 : i32
    %89 = arith.index_cast %88 : i32 to index
    %90 = memref.load %arg1[%89] : memref<64xi32, #tpu.memory_space<smem>>
    %91 = arith.index_cast %90 : i32 to index
    %c0_30 = arith.constant 0 : index
    %92 = vector.load %arg2[%91, %c0_30] : memref<128x128xf32, #tpu.memory_space<vmem>>, vector<1x128xf32>
    %c14 = arith.constant 14 : index
    %c0_31 = arith.constant 0 : index
    %93 = vector.load %arg10[%c14, %c0_31] : memref<64x128xf32, #tpu.memory_space<vmem>>, vector<1x128xf32>
    tpu.vector_store %arg10[%c14, %c0_31], %92 {strides = array<i32>} : memref<64x128xf32, #tpu.memory_space<vmem>>, vector<1x128xf32>,
    %c15_i32 = arith.constant 15 : i32
    %94 = arith.addi %0, %c15_i32 : i32
    %95 = arith.index_cast %94 : i32 to index
    %96 = memref.load %arg1[%95] : memref<64xi32, #tpu.memory_space<smem>>
    %97 = arith.index_cast %96 : i32 to index
    %c0_32 = arith.constant 0 : index
    %98 = vector.load %arg2[%97, %c0_32] : memref<128x128xf32, #tpu.memory_space<vmem>>, vector<1x128xf32>
    %c15 = arith.constant 15 : index
    %c0_33 = arith.constant 0 : index
    %99 = vector.load %arg10[%c15, %c0_33] : memref<64x128xf32, #tpu.memory_space<vmem>>, vector<1x128xf32>
    tpu.vector_store %arg10[%c15, %c0_33], %98 {strides = array<i32>} : memref<64x128xf32, #tpu.memory_space<vmem>>, vector<1x128xf32>,
    %c16_i32 = arith.constant 16 : i32
    %100 = arith.addi %0, %c16_i32 : i32
    %101 = arith.index_cast %100 : i32 to index
    %102 = memref.load %arg1[%101] : memref<64xi32, #tpu.memory_space<smem>>
    %103 = arith.index_cast %102 : i32 to index
    %c0_34 = arith.constant 0 : index
    %104 = vector.load %arg2[%103, %c0_34] : memref<128x128xf32, #tpu.memory_space<vmem>>, vector<1x128xf32>
    %c16 = arith.constant 16 : index
    %c0_35 = arith.constant 0 : index
    %105 = vector.load %arg10[%c16, %c0_35] : memref<64x128xf32, #tpu.memory_space<vmem>>, vector<1x128xf32>
    tpu.vector_store %arg10[%c16, %c0_35], %104 {strides = array<i32>} : memref<64x128xf32, #tpu.memory_space<vmem>>, vector<1x128xf32>,
    %c17_i32 = arith.constant 17 : i32
    %106 = arith.addi %0, %c17_i32 : i32
    %107 = arith.index_cast %106 : i32 to index
    %108 = memref.load %arg1[%107] : memref<64xi32, #tpu.memory_space<smem>>
    %109 = arith.index_cast %108 : i32 to index
    %c0_36 = arith.constant 0 : index
    %110 = vector.load %arg2[%109, %c0_36] : memref<128x128xf32, #tpu.memory_space<vmem>>, vector<1x128xf32>
    %c17 = arith.constant 17 : index
    %c0_37 = arith.constant 0 : index
    %111 = vector.load %arg10[%c17, %c0_37] : memref<64x128xf32, #tpu.memory_space<vmem>>, vector<1x128xf32>
    tpu.vector_store %arg10[%c17, %c0_37], %110 {strides = array<i32>} : memref<64x128xf32, #tpu.memory_space<vmem>>, vector<1x128xf32>,
    %c18_i32 = arith.constant 18 : i32
    %112 = arith.addi %0, %c18_i32 : i32
    %113 = arith.index_cast %112 : i32 to index
    %114 = memref.load %arg1[%113] : memref<64xi32, #tpu.memory_space<smem>>
    %115 = arith.index_cast %114 : i32 to index
    %c0_38 = arith.constant 0 : index
    %116 = vector.load %arg2[%115, %c0_38] : memref<128x128xf32, #tpu.memory_space<vmem>>, vector<1x128xf32>
    %c18 = arith.constant 18 : index
    %c0_39 = arith.constant 0 : index
    %117 = vector.load %arg10[%c18, %c0_39] : memref<64x128xf32, #tpu.memory_space<vmem>>, vector<1x128xf32>
    tpu.vector_store %arg10[%c18, %c0_39], %116 {strides = array<i32>} : memref<64x128xf32, #tpu.memory_space<vmem>>, vector<1x128xf32>,
    %c19_i32 = arith.constant 19 : i32
    %118 = arith.addi %0, %c19_i32 : i32
    %119 = arith.index_cast %118 : i32 to index
    %120 = memref.load %arg1[%119] : memref<64xi32, #tpu.memory_space<smem>>
    %121 = arith.index_cast %120 : i32 to index
    %c0_40 = arith.constant 0 : index
    %122 = vector.load %arg2[%121, %c0_40] : memref<128x128xf32, #tpu.memory_space<vmem>>, vector<1x128xf32>
    %c19 = arith.constant 19 : index
    %c0_41 = arith.constant 0 : index
    %123 = vector.load %arg10[%c19, %c0_41] : memref<64x128xf32, #tpu.memory_space<vmem>>, vector<1x128xf32>
    tpu.vector_store %arg10[%c19, %c0_41], %122 {strides = array<i32>} : memref<64x128xf32, #tpu.memory_space<vmem>>, vector<1x128xf32>,
    %c20_i32 = arith.constant 20 : i32
    %124 = arith.addi %0, %c20_i32 : i32
    %125 = arith.index_cast %124 : i32 to index
    %126 = memref.load %arg1[%125] : memref<64xi32, #tpu.memory_space<smem>>
    %127 = arith.index_cast %126 : i32 to index
    %c0_42 = arith.constant 0 : index
    %128 = vector.load %arg2[%127, %c0_42] : memref<128x128xf32, #tpu.memory_space<vmem>>, vector<1x128xf32>
    %c20 = arith.constant 20 : index
    %c0_43 = arith.constant 0 : index
    %129 = vector.load %arg10[%c20, %c0_43] : memref<64x128xf32, #tpu.memory_space<vmem>>, vector<1x128xf32>
    tpu.vector_store %arg10[%c20, %c0_43], %128 {strides = array<i32>} : memref<64x128xf32, #tpu.memory_space<vmem>>, vector<1x128xf32>,
    %c21_i32 = arith.constant 21 : i32
    %130 = arith.addi %0, %c21_i32 : i32
    %131 = arith.index_cast %130 : i32 to index
    %132 = memref.load %arg1[%131] : memref<64xi32, #tpu.memory_space<smem>>
    %133 = arith.index_cast %132 : i32 to index
    %c0_44 = arith.constant 0 : index
    %134 = vector.load %arg2[%133, %c0_44] : memref<128x128xf32, #tpu.memory_space<vmem>>, vector<1x128xf32>
    %c21 = arith.constant 21 : index
    %c0_45 = arith.constant 0 : index
    %135 = vector.load %arg10[%c21, %c0_45] : memref<64x128xf32, #tpu.memory_space<vmem>>, vector<1x128xf32>
    tpu.vector_store %arg10[%c21, %c0_45], %134 {strides = array<i32>} : memref<64x128xf32, #tpu.memory_space<vmem>>, vector<1x128xf32>,
    %c22_i32 = arith.constant 22 : i32
    %136 = arith.addi %0, %c22_i32 : i32
    %137 = arith.index_cast %136 : i32 to index
    %138 = memref.load %arg1[%137] : memref<64xi32, #tpu.memory_space<smem>>
    %139 = arith.index_cast %138 : i32 to index
    %c0_46 = arith.constant 0 : index
    %140 = vector.load %arg2[%139, %c0_46] : memref<128x128xf32, #tpu.memory_space<vmem>>, vector<1x128xf32>
    %c22 = arith.constant 22 : index
    %c0_47 = arith.constant 0 : index
    %141 = vector.load %arg10[%c22, %c0_47] : memref<64x128xf32, #tpu.memory_space<vmem>>, vector<1x128xf32>
    tpu.vector_store %arg10[%c22, %c0_47], %140 {strides = array<i32>} : memref<64x128xf32, #tpu.memory_space<vmem>>, vector<1x128xf32>,
    %c23_i32 = arith.constant 23 : i32
    %142 = arith.addi %0, %c23_i32 : i32
    %143 = arith.index_cast %142 : i32 to index
    %144 = memref.load %arg1[%143] : memref<64xi32, #tpu.memory_space<smem>>
    %145 = arith.index_cast %144 : i32 to index
    %c0_48 = arith.constant 0 : index
    %146 = vector.load %arg2[%145, %c0_48] : memref<128x128xf32, #tpu.memory_space<vmem>>, vector<1x128xf32>
    %c23 = arith.constant 23 : index
    %c0_49 = arith.constant 0 : index
    %147 = vector.load %arg10[%c23, %c0_49] : memref<64x128xf32, #tpu.memory_space<vmem>>, vector<1x128xf32>
    tpu.vector_store %arg10[%c23, %c0_49], %146 {strides = array<i32>} : memref<64x128xf32, #tpu.memory_space<vmem>>, vector<1x128xf32>,
    %c24_i32 = arith.constant 24 : i32
    %148 = arith.addi %0, %c24_i32 : i32
    %149 = arith.index_cast %148 : i32 to index
    %150 = memref.load %arg1[%149] : memref<64xi32, #tpu.memory_space<smem>>
    %151 = arith.index_cast %150 : i32 to index
    %c0_50 = arith.constant 0 : index
    %152 = vector.load %arg2[%151, %c0_50] : memref<128x128xf32, #tpu.memory_space<vmem>>, vector<1x128xf32>
    %c24 = arith.constant 24 : index
    %c0_51 = arith.constant 0 : index
    %153 = vector.load %arg10[%c24, %c0_51] : memref<64x128xf32, #tpu.memory_space<vmem>>, vector<1x128xf32>
    tpu.vector_store %arg10[%c24, %c0_51], %152 {strides = array<i32>} : memref<64x128xf32, #tpu.memory_space<vmem>>, vector<1x128xf32>,
    %c25_i32 = arith.constant 25 : i32
    %154 = arith.addi %0, %c25_i32 : i32
    %155 = arith.index_cast %154 : i32 to index
    %156 = memref.load %arg1[%155] : memref<64xi32, #tpu.memory_space<smem>>
    %157 = arith.index_cast %156 : i32 to index
    %c0_52 = arith.constant 0 : index
    %158 = vector.load %arg2[%157, %c0_52] : memref<128x128xf32, #tpu.memory_space<vmem>>, vector<1x128xf32>
    %c25 = arith.constant 25 : index
    %c0_53 = arith.constant 0 : index
    %159 = vector.load %arg10[%c25, %c0_53] : memref<64x128xf32, #tpu.memory_space<vmem>>, vector<1x128xf32>
    tpu.vector_store %arg10[%c25, %c0_53], %158 {strides = array<i32>} : memref<64x128xf32, #tpu.memory_space<vmem>>, vector<1x128xf32>,
    %c26_i32 = arith.constant 26 : i32
    %160 = arith.addi %0, %c26_i32 : i32
    %161 = arith.index_cast %160 : i32 to index
    %162 = memref.load %arg1[%161] : memref<64xi32, #tpu.memory_space<smem>>
    %163 = arith.index_cast %162 : i32 to index
    %c0_54 = arith.constant 0 : index
    %164 = vector.load %arg2[%163, %c0_54] : memref<128x128xf32, #tpu.memory_space<vmem>>, vector<1x128xf32>
    %c26 = arith.constant 26 : index
    %c0_55 = arith.constant 0 : index
    %165 = vector.load %arg10[%c26, %c0_55] : memref<64x128xf32, #tpu.memory_space<vmem>>, vector<1x128xf32>
    tpu.vector_store %arg10[%c26, %c0_55], %164 {strides = array<i32>} : memref<64x128xf32, #tpu.memory_space<vmem>>, vector<1x128xf32>,
    %c27_i32 = arith.constant 27 : i32
    %166 = arith.addi %0, %c27_i32 : i32
    %167 = arith.index_cast %166 : i32 to index
    %168 = memref.load %arg1[%167] : memref<64xi32, #tpu.memory_space<smem>>
    %169 = arith.index_cast %168 : i32 to index
    %c0_56 = arith.constant 0 : index
    %170 = vector.load %arg2[%169, %c0_56] : memref<128x128xf32, #tpu.memory_space<vmem>>, vector<1x128xf32>
    %c27 = arith.constant 27 : index
    %c0_57 = arith.constant 0 : index
    %171 = vector.load %arg10[%c27, %c0_57] : memref<64x128xf32, #tpu.memory_space<vmem>>, vector<1x128xf32>
    tpu.vector_store %arg10[%c27, %c0_57], %170 {strides = array<i32>} : memref<64x128xf32, #tpu.memory_space<vmem>>, vector<1x128xf32>,
    %c28_i32 = arith.constant 28 : i32
    %172 = arith.addi %0, %c28_i32 : i32
    %173 = arith.index_cast %172 : i32 to index
    %174 = memref.load %arg1[%173] : memref<64xi32, #tpu.memory_space<smem>>
    %175 = arith.index_cast %174 : i32 to index
    %c0_58 = arith.constant 0 : index
    %176 = vector.load %arg2[%175, %c0_58] : memref<128x128xf32, #tpu.memory_space<vmem>>, vector<1x128xf32>
    %c28 = arith.constant 28 : index
    %c0_59 = arith.constant 0 : index
    %177 = vector.load %arg10[%c28, %c0_59] : memref<64x128xf32, #tpu.memory_space<vmem>>, vector<1x128xf32>
    tpu.vector_store %arg10[%c28, %c0_59], %176 {strides = array<i32>} : memref<64x128xf32, #tpu.memory_space<vmem>>, vector<1x128xf32>,
    %c29_i32 = arith.constant 29 : i32
    %178 = arith.addi %0, %c29_i32 : i32
    %179 = arith.index_cast %178 : i32 to index
    %180 = memref.load %arg1[%179] : memref<64xi32, #tpu.memory_space<smem>>
    %181 = arith.index_cast %180 : i32 to index
    %c0_60 = arith.constant 0 : index
    %182 = vector.load %arg2[%181, %c0_60] : memref<128x128xf32, #tpu.memory_space<vmem>>, vector<1x128xf32>
    %c29 = arith.constant 29 : index
    %c0_61 = arith.constant 0 : index
    %183 = vector.load %arg10[%c29, %c0_61] : memref<64x128xf32, #tpu.memory_space<vmem>>, vector<1x128xf32>
    tpu.vector_store %arg10[%c29, %c0_61], %182 {strides = array<i32>} : memref<64x128xf32, #tpu.memory_space<vmem>>, vector<1x128xf32>,
    %c30_i32 = arith.constant 30 : i32
    %184 = arith.addi %0, %c30_i32 : i32
    %185 = arith.index_cast %184 : i32 to index
    %186 = memref.load %arg1[%185] : memref<64xi32, #tpu.memory_space<smem>>
    %187 = arith.index_cast %186 : i32 to index
    %c0_62 = arith.constant 0 : index
    %188 = vector.load %arg2[%187, %c0_62] : memref<128x128xf32, #tpu.memory_space<vmem>>, vector<1x128xf32>
    %c30 = arith.constant 30 : index
    %c0_63 = arith.constant 0 : index
    %189 = vector.load %arg10[%c30, %c0_63] : memref<64x128xf32, #tpu.memory_space<vmem>>, vector<1x128xf32>
    tpu.vector_store %arg10[%c30, %c0_63], %188 {strides = array<i32>} : memref<64x128xf32, #tpu.memory_space<vmem>>, vector<1x128xf32>,
    %c31_i32 = arith.constant 31 : i32
    %190 = arith.addi %0, %c31_i32 : i32
    %191 = arith.index_cast %190 : i32 to index
    %192 = memref.load %arg1[%191] : memref<64xi32, #tpu.memory_space<smem>>
    %193 = arith.index_cast %192 : i32 to index
    %c0_64 = arith.constant 0 : index
    %194 = vector.load %arg2[%193, %c0_64] : memref<128x128xf32, #tpu.memory_space<vmem>>, vector<1x128xf32>
    %c31 = arith.constant 31 : index
    %c0_65 = arith.constant 0 : index
    %195 = vector.load %arg10[%c31, %c0_65] : memref<64x128xf32, #tpu.memory_space<vmem>>, vector<1x128xf32>
    tpu.vector_store %arg10[%c31, %c0_65], %194 {strides = array<i32>} : memref<64x128xf32, #tpu.memory_space<vmem>>, vector<1x128xf32>,
    %c32_i32 = arith.constant 32 : i32
    %196 = arith.addi %0, %c32_i32 : i32
    %197 = arith.index_cast %196 : i32 to index
    %198 = memref.load %arg1[%197] : memref<64xi32, #tpu.memory_space<smem>>
    %199 = arith.index_cast %198 : i32 to index
    %c0_66 = arith.constant 0 : index
    %200 = vector.load %arg2[%199, %c0_66] : memref<128x128xf32, #tpu.memory_space<vmem>>, vector<1x128xf32>
    %c32 = arith.constant 32 : index
    %c0_67 = arith.constant 0 : index
    %201 = vector.load %arg10[%c32, %c0_67] : memref<64x128xf32, #tpu.memory_space<vmem>>, vector<1x128xf32>
    tpu.vector_store %arg10[%c32, %c0_67], %200 {strides = array<i32>} : memref<64x128xf32, #tpu.memory_space<vmem>>, vector<1x128xf32>,
    %c33_i32 = arith.constant 33 : i32
    %202 = arith.addi %0, %c33_i32 : i32
    %203 = arith.index_cast %202 : i32 to index
    %204 = memref.load %arg1[%203] : memref<64xi32, #tpu.memory_space<smem>>
    %205 = arith.index_cast %204 : i32 to index
    %c0_68 = arith.constant 0 : index
    %206 = vector.load %arg2[%205, %c0_68] : memref<128x128xf32, #tpu.memory_space<vmem>>, vector<1x128xf32>
    %c33 = arith.constant 33 : index
    %c0_69 = arith.constant 0 : index
    %207 = vector.load %arg10[%c33, %c0_69] : memref<64x128xf32, #tpu.memory_space<vmem>>, vector<1x128xf32>
    tpu.vector_store %arg10[%c33, %c0_69], %206 {strides = array<i32>} : memref<64x128xf32, #tpu.memory_space<vmem>>, vector<1x128xf32>,
    %c34_i32 = arith.constant 34 : i32
    %208 = arith.addi %0, %c34_i32 : i32
    %209 = arith.index_cast %208 : i32 to index
    %210 = memref.load %arg1[%209] : memref<64xi32, #tpu.memory_space<smem>>
    %211 = arith.index_cast %210 : i32 to index
    %c0_70 = arith.constant 0 : index
    %212 = vector.load %arg2[%211, %c0_70] : memref<128x128xf32, #tpu.memory_space<vmem>>, vector<1x128xf32>
    %c34 = arith.constant 34 : index
    %c0_71 = arith.constant 0 : index
    %213 = vector.load %arg10[%c34, %c0_71] : memref<64x128xf32, #tpu.memory_space<vmem>>, vector<1x128xf32>
    tpu.vector_store %arg10[%c34, %c0_71], %212 {strides = array<i32>} : memref<64x128xf32, #tpu.memory_space<vmem>>, vector<1x128xf32>,
    %c35_i32 = arith.constant 35 : i32
    %214 = arith.addi %0, %c35_i32 : i32
    %215 = arith.index_cast %214 : i32 to index
    %216 = memref.load %arg1[%215] : memref<64xi32, #tpu.memory_space<smem>>
    %217 = arith.index_cast %216 : i32 to index
    %c0_72 = arith.constant 0 : index
    %218 = vector.load %arg2[%217, %c0_72] : memref<128x128xf32, #tpu.memory_space<vmem>>, vector<1x128xf32>
    %c35 = arith.constant 35 : index
    %c0_73 = arith.constant 0 : index
    %219 = vector.load %arg10[%c35, %c0_73] : memref<64x128xf32, #tpu.memory_space<vmem>>, vector<1x128xf32>
    tpu.vector_store %arg10[%c35, %c0_73], %218 {strides = array<i32>} : memref<64x128xf32, #tpu.memory_space<vmem>>, vector<1x128xf32>,
    %c36_i32 = arith.constant 36 : i32
    %220 = arith.addi %0, %c36_i32 : i32
    %221 = arith.index_cast %220 : i32 to index
    %222 = memref.load %arg1[%221] : memref<64xi32, #tpu.memory_space<smem>>
    %223 = arith.index_cast %222 : i32 to index
    %c0_74 = arith.constant 0 : index
    %224 = vector.load %arg2[%223, %c0_74] : memref<128x128xf32, #tpu.memory_space<vmem>>, vector<1x128xf32>
    %c36 = arith.constant 36 : index
    %c0_75 = arith.constant 0 : index
    %225 = vector.load %arg10[%c36, %c0_75] : memref<64x128xf32, #tpu.memory_space<vmem>>, vector<1x128xf32>
    tpu.vector_store %arg10[%c36, %c0_75], %224 {strides = array<i32>} : memref<64x128xf32, #tpu.memory_space<vmem>>, vector<1x128xf32>,
    %c37_i32 = arith.constant 37 : i32
    %226 = arith.addi %0, %c37_i32 : i32
    %227 = arith.index_cast %226 : i32 to index
    %228 = memref.load %arg1[%227] : memref<64xi32, #tpu.memory_space<smem>>
    %229 = arith.index_cast %228 : i32 to index
    %c0_76 = arith.constant 0 : index
    %230 = vector.load %arg2[%229, %c0_76] : memref<128x128xf32, #tpu.memory_space<vmem>>, vector<1x128xf32>
    %c37 = arith.constant 37 : index
    %c0_77 = arith.constant 0 : index
    %231 = vector.load %arg10[%c37, %c0_77] : memref<64x128xf32, #tpu.memory_space<vmem>>, vector<1x128xf32>
    tpu.vector_store %arg10[%c37, %c0_77], %230 {strides = array<i32>} : memref<64x128xf32, #tpu.memory_space<vmem>>, vector<1x128xf32>,
    %c38_i32 = arith.constant 38 : i32
    %232 = arith.addi %0, %c38_i32 : i32
    %233 = arith.index_cast %232 : i32 to index
    %234 = memref.load %arg1[%233] : memref<64xi32, #tpu.memory_space<smem>>
    %235 = arith.index_cast %234 : i32 to index
    %c0_78 = arith.constant 0 : index
    %236 = vector.load %arg2[%235, %c0_78] : memref<128x128xf32, #tpu.memory_space<vmem>>, vector<1x128xf32>
    %c38 = arith.constant 38 : index
    %c0_79 = arith.constant 0 : index
    %237 = vector.load %arg10[%c38, %c0_79] : memref<64x128xf32, #tpu.memory_space<vmem>>, vector<1x128xf32>
    tpu.vector_store %arg10[%c38, %c0_79], %236 {strides = array<i32>} : memref<64x128xf32, #tpu.memory_space<vmem>>, vector<1x128xf32>,
    %c39_i32 = arith.constant 39 : i32
    %238 = arith.addi %0, %c39_i32 : i32
    %239 = arith.index_cast %238 : i32 to index
    %240 = memref.load %arg1[%239] : memref<64xi32, #tpu.memory_space<smem>>
    %241 = arith.index_cast %240 : i32 to index
    %c0_80 = arith.constant 0 : index
    %242 = vector.load %arg2[%241, %c0_80] : memref<128x128xf32, #tpu.memory_space<vmem>>, vector<1x128xf32>
    %c39 = arith.constant 39 : index
    %c0_81 = arith.constant 0 : index
    %243 = vector.load %arg10[%c39, %c0_81] : memref<64x128xf32, #tpu.memory_space<vmem>>, vector<1x128xf32>
    tpu.vector_store %arg10[%c39, %c0_81], %242 {strides = array<i32>} : memref<64x128xf32, #tpu.memory_space<vmem>>, vector<1x128xf32>,
    %c40_i32 = arith.constant 40 : i32
    %244 = arith.addi %0, %c40_i32 : i32
    %245 = arith.index_cast %244 : i32 to index
    %246 = memref.load %arg1[%245] : memref<64xi32, #tpu.memory_space<smem>>
    %247 = arith.index_cast %246 : i32 to index
    %c0_82 = arith.constant 0 : index
    %248 = vector.load %arg2[%247, %c0_82] : memref<128x128xf32, #tpu.memory_space<vmem>>, vector<1x128xf32>
    %c40 = arith.constant 40 : index
    %c0_83 = arith.constant 0 : index
    %249 = vector.load %arg10[%c40, %c0_83] : memref<64x128xf32, #tpu.memory_space<vmem>>, vector<1x128xf32>
    tpu.vector_store %arg10[%c40, %c0_83], %248 {strides = array<i32>} : memref<64x128xf32, #tpu.memory_space<vmem>>, vector<1x128xf32>,
    %c41_i32 = arith.constant 41 : i32
    %250 = arith.addi %0, %c41_i32 : i32
    %251 = arith.index_cast %250 : i32 to index
    %252 = memref.load %arg1[%251] : memref<64xi32, #tpu.memory_space<smem>>
    %253 = arith.index_cast %252 : i32 to index
    %c0_84 = arith.constant 0 : index
    %254 = vector.load %arg2[%253, %c0_84] : memref<128x128xf32, #tpu.memory_space<vmem>>, vector<1x128xf32>
    %c41 = arith.constant 41 : index
    %c0_85 = arith.constant 0 : index
    %255 = vector.load %arg10[%c41, %c0_85] : memref<64x128xf32, #tpu.memory_space<vmem>>, vector<1x128xf32>
    tpu.vector_store %arg10[%c41, %c0_85], %254 {strides = array<i32>} : memref<64x128xf32, #tpu.memory_space<vmem>>, vector<1x128xf32>,
    %c42_i32 = arith.constant 42 : i32
    %256 = arith.addi %0, %c42_i32 : i32
    %257 = arith.index_cast %256 : i32 to index
    %258 = memref.load %arg1[%257] : memref<64xi32, #tpu.memory_space<smem>>
    %259 = arith.index_cast %258 : i32 to index
    %c0_86 = arith.constant 0 : index
    %260 = vector.load %arg2[%259, %c0_86] : memref<128x128xf32, #tpu.memory_space<vmem>>, vector<1x128xf32>
    %c42 = arith.constant 42 : index
    %c0_87 = arith.constant 0 : index
    %261 = vector.load %arg10[%c42, %c0_87] : memref<64x128xf32, #tpu.memory_space<vmem>>, vector<1x128xf32>
    tpu.vector_store %arg10[%c42, %c0_87], %260 {strides = array<i32>} : memref<64x128xf32, #tpu.memory_space<vmem>>, vector<1x128xf32>,
    %c43_i32 = arith.constant 43 : i32
    %262 = arith.addi %0, %c43_i32 : i32
    %263 = arith.index_cast %262 : i32 to index
    %264 = memref.load %arg1[%263] : memref<64xi32, #tpu.memory_space<smem>>
    %265 = arith.index_cast %264 : i32 to index
    %c0_88 = arith.constant 0 : index
    %266 = vector.load %arg2[%265, %c0_88] : memref<128x128xf32, #tpu.memory_space<vmem>>, vector<1x128xf32>
    %c43 = arith.constant 43 : index
    %c0_89 = arith.constant 0 : index
    %267 = vector.load %arg10[%c43, %c0_89] : memref<64x128xf32, #tpu.memory_space<vmem>>, vector<1x128xf32>
    tpu.vector_store %arg10[%c43, %c0_89], %266 {strides = array<i32>} : memref<64x128xf32, #tpu.memory_space<vmem>>, vector<1x128xf32>,
    %c44_i32 = arith.constant 44 : i32
    %268 = arith.addi %0, %c44_i32 : i32
    %269 = arith.index_cast %268 : i32 to index
    %270 = memref.load %arg1[%269] : memref<64xi32, #tpu.memory_space<smem>>
    %271 = arith.index_cast %270 : i32 to index
    %c0_90 = arith.constant 0 : index
    %272 = vector.load %arg2[%271, %c0_90] : memref<128x128xf32, #tpu.memory_space<vmem>>, vector<1x128xf32>
    %c44 = arith.constant 44 : index
    %c0_91 = arith.constant 0 : index
    %273 = vector.load %arg10[%c44, %c0_91] : memref<64x128xf32, #tpu.memory_space<vmem>>, vector<1x128xf32>
    tpu.vector_store %arg10[%c44, %c0_91], %272 {strides = array<i32>} : memref<64x128xf32, #tpu.memory_space<vmem>>, vector<1x128xf32>,
    %c45_i32 = arith.constant 45 : i32
    %274 = arith.addi %0, %c45_i32 : i32
    %275 = arith.index_cast %274 : i32 to index
    %276 = memref.load %arg1[%275] : memref<64xi32, #tpu.memory_space<smem>>
    %277 = arith.index_cast %276 : i32 to index
    %c0_92 = arith.constant 0 : index
    %278 = vector.load %arg2[%277, %c0_92] : memref<128x128xf32, #tpu.memory_space<vmem>>, vector<1x128xf32>
    %c45 = arith.constant 45 : index
    %c0_93 = arith.constant 0 : index
    %279 = vector.load %arg10[%c45, %c0_93] : memref<64x128xf32, #tpu.memory_space<vmem>>, vector<1x128xf32>
    tpu.vector_store %arg10[%c45, %c0_93], %278 {strides = array<i32>} : memref<64x128xf32, #tpu.memory_space<vmem>>, vector<1x128xf32>,
    %c46_i32 = arith.constant 46 : i32
    %280 = arith.addi %0, %c46_i32 : i32
    %281 = arith.index_cast %280 : i32 to index
    %282 = memref.load %arg1[%281] : memref<64xi32, #tpu.memory_space<smem>>
    %283 = arith.index_cast %282 : i32 to index
    %c0_94 = arith.constant 0 : index
    %284 = vector.load %arg2[%283, %c0_94] : memref<128x128xf32, #tpu.memory_space<vmem>>, vector<1x128xf32>
    %c46 = arith.constant 46 : index
    %c0_95 = arith.constant 0 : index
    %285 = vector.load %arg10[%c46, %c0_95] : memref<64x128xf32, #tpu.memory_space<vmem>>, vector<1x128xf32>
    tpu.vector_store %arg10[%c46, %c0_95], %284 {strides = array<i32>} : memref<64x128xf32, #tpu.memory_space<vmem>>, vector<1x128xf32>,
    %c47_i32 = arith.constant 47 : i32
    %286 = arith.addi %0, %c47_i32 : i32
    %287 = arith.index_cast %286 : i32 to index
    %288 = memref.load %arg1[%287] : memref<64xi32, #tpu.memory_space<smem>>
    %289 = arith.index_cast %288 : i32 to index
    %c0_96 = arith.constant 0 : index
    %290 = vector.load %arg2[%289, %c0_96] : memref<128x128xf32, #tpu.memory_space<vmem>>, vector<1x128xf32>
    %c47 = arith.constant 47 : index
    %c0_97 = arith.constant 0 : index
    %291 = vector.load %arg10[%c47, %c0_97] : memref<64x128xf32, #tpu.memory_space<vmem>>, vector<1x128xf32>
    tpu.vector_store %arg10[%c47, %c0_97], %290 {strides = array<i32>} : memref<64x128xf32, #tpu.memory_space<vmem>>, vector<1x128xf32>,
    %c48_i32 = arith.constant 48 : i32
    %292 = arith.addi %0, %c48_i32 : i32
    %293 = arith.index_cast %292 : i32 to index
    %294 = memref.load %arg1[%293] : memref<64xi32, #tpu.memory_space<smem>>
    %295 = arith.index_cast %294 : i32 to index
    %c0_98 = arith.constant 0 : index
    %296 = vector.load %arg2[%295, %c0_98] : memref<128x128xf32, #tpu.memory_space<vmem>>, vector<1x128xf32>
    %c48 = arith.constant 48 : index
    %c0_99 = arith.constant 0 : index
    %297 = vector.load %arg10[%c48, %c0_99] : memref<64x128xf32, #tpu.memory_space<vmem>>, vector<1x128xf32>
    tpu.vector_store %arg10[%c48, %c0_99], %296 {strides = array<i32>} : memref<64x128xf32, #tpu.memory_space<vmem>>, vector<1x128xf32>,
    %c49_i32 = arith.constant 49 : i32
    %298 = arith.addi %0, %c49_i32 : i32
    %299 = arith.index_cast %298 : i32 to index
    %300 = memref.load %arg1[%299] : memref<64xi32, #tpu.memory_space<smem>>
    %301 = arith.index_cast %300 : i32 to index
    %c0_100 = arith.constant 0 : index
    %302 = vector.load %arg2[%301, %c0_100] : memref<128x128xf32, #tpu.memory_space<vmem>>, vector<1x128xf32>
    %c49 = arith.constant 49 : index
    %c0_101 = arith.constant 0 : index
    %303 = vector.load %arg10[%c49, %c0_101] : memref<64x128xf32, #tpu.memory_space<vmem>>, vector<1x128xf32>
    tpu.vector_store %arg10[%c49, %c0_101], %302 {strides = array<i32>} : memref<64x128xf32, #tpu.memory_space<vmem>>, vector<1x128xf32>,
    %c50_i32 = arith.constant 50 : i32
    %304 = arith.addi %0, %c50_i32 : i32
    %305 = arith.index_cast %304 : i32 to index
    %306 = memref.load %arg1[%305] : memref<64xi32, #tpu.memory_space<smem>>
    %307 = arith.index_cast %306 : i32 to index
    %c0_102 = arith.constant 0 : index
    %308 = vector.load %arg2[%307, %c0_102] : memref<128x128xf32, #tpu.memory_space<vmem>>, vector<1x128xf32>
    %c50 = arith.constant 50 : index
    %c0_103 = arith.constant 0 : index
    %309 = vector.load %arg10[%c50, %c0_103] : memref<64x128xf32, #tpu.memory_space<vmem>>, vector<1x128xf32>
    tpu.vector_store %arg10[%c50, %c0_103], %308 {strides = array<i32>} : memref<64x128xf32, #tpu.memory_space<vmem>>, vector<1x128xf32>,
    %c51_i32 = arith.constant 51 : i32
    %310 = arith.addi %0, %c51_i32 : i32
    %311 = arith.index_cast %310 : i32 to index
    %312 = memref.load %arg1[%311] : memref<64xi32, #tpu.memory_space<smem>>
    %313 = arith.index_cast %312 : i32 to index
    %c0_104 = arith.constant 0 : index
    %314 = vector.load %arg2[%313, %c0_104] : memref<128x128xf32, #tpu.memory_space<vmem>>, vector<1x128xf32>
    %c51 = arith.constant 51 : index
    %c0_105 = arith.constant 0 : index
    %315 = vector.load %arg10[%c51, %c0_105] : memref<64x128xf32, #tpu.memory_space<vmem>>, vector<1x128xf32>
    tpu.vector_store %arg10[%c51, %c0_105], %314 {strides = array<i32>} : memref<64x128xf32, #tpu.memory_space<vmem>>, vector<1x128xf32>,
    %c52_i32 = arith.constant 52 : i32
    %316 = arith.addi %0, %c52_i32 : i32
    %317 = arith.index_cast %316 : i32 to index
    %318 = memref.load %arg1[%317] : memref<64xi32, #tpu.memory_space<smem>>
    %319 = arith.index_cast %318 : i32 to index
    %c0_106 = arith.constant 0 : index
    %320 = vector.load %arg2[%319, %c0_106] : memref<128x128xf32, #tpu.memory_space<vmem>>, vector<1x128xf32>
    %c52 = arith.constant 52 : index
    %c0_107 = arith.constant 0 : index
    %321 = vector.load %arg10[%c52, %c0_107] : memref<64x128xf32, #tpu.memory_space<vmem>>, vector<1x128xf32>
    tpu.vector_store %arg10[%c52, %c0_107], %320 {strides = array<i32>} : memref<64x128xf32, #tpu.memory_space<vmem>>, vector<1x128xf32>,
    %c53_i32 = arith.constant 53 : i32
    %322 = arith.addi %0, %c53_i32 : i32
    %323 = arith.index_cast %322 : i32 to index
    %324 = memref.load %arg1[%323] : memref<64xi32, #tpu.memory_space<smem>>
    %325 = arith.index_cast %324 : i32 to index
    %c0_108 = arith.constant 0 : index
    %326 = vector.load %arg2[%325, %c0_108] : memref<128x128xf32, #tpu.memory_space<vmem>>, vector<1x128xf32>
    %c53 = arith.constant 53 : index
    %c0_109 = arith.constant 0 : index
    %327 = vector.load %arg10[%c53, %c0_109] : memref<64x128xf32, #tpu.memory_space<vmem>>, vector<1x128xf32>
    tpu.vector_store %arg10[%c53, %c0_109], %326 {strides = array<i32>} : memref<64x128xf32, #tpu.memory_space<vmem>>, vector<1x128xf32>,
    %c54_i32 = arith.constant 54 : i32
    %328 = arith.addi %0, %c54_i32 : i32
    %329 = arith.index_cast %328 : i32 to index
    %330 = memref.load %arg1[%329] : memref<64xi32, #tpu.memory_space<smem>>
    %331 = arith.index_cast %330 : i32 to index
    %c0_110 = arith.constant 0 : index
    %332 = vector.load %arg2[%331, %c0_110] : memref<128x128xf32, #tpu.memory_space<vmem>>, vector<1x128xf32>
    %c54 = arith.constant 54 : index
    %c0_111 = arith.constant 0 : index
    %333 = vector.load %arg10[%c54, %c0_111] : memref<64x128xf32, #tpu.memory_space<vmem>>, vector<1x128xf32>
    tpu.vector_store %arg10[%c54, %c0_111], %332 {strides = array<i32>} : memref<64x128xf32, #tpu.memory_space<vmem>>, vector<1x128xf32>,
    %c55_i32 = arith.constant 55 : i32
    %334 = arith.addi %0, %c55_i32 : i32
    %335 = arith.index_cast %334 : i32 to index
    %336 = memref.load %arg1[%335] : memref<64xi32, #tpu.memory_space<smem>>
    %337 = arith.index_cast %336 : i32 to index
    %c0_112 = arith.constant 0 : index
    %338 = vector.load %arg2[%337, %c0_112] : memref<128x128xf32, #tpu.memory_space<vmem>>, vector<1x128xf32>
    %c55 = arith.constant 55 : index
    %c0_113 = arith.constant 0 : index
    %339 = vector.load %arg10[%c55, %c0_113] : memref<64x128xf32, #tpu.memory_space<vmem>>, vector<1x128xf32>
    tpu.vector_store %arg10[%c55, %c0_113], %338 {strides = array<i32>} : memref<64x128xf32, #tpu.memory_space<vmem>>, vector<1x128xf32>,
    %c56_i32 = arith.constant 56 : i32
    %340 = arith.addi %0, %c56_i32 : i32
    %341 = arith.index_cast %340 : i32 to index
    %342 = memref.load %arg1[%341] : memref<64xi32, #tpu.memory_space<smem>>
    %343 = arith.index_cast %342 : i32 to index
    %c0_114 = arith.constant 0 : index
    %344 = vector.load %arg2[%343, %c0_114] : memref<128x128xf32, #tpu.memory_space<vmem>>, vector<1x128xf32>
    %c56 = arith.constant 56 : index
    %c0_115 = arith.constant 0 : index
    %345 = vector.load %arg10[%c56, %c0_115] : memref<64x128xf32, #tpu.memory_space<vmem>>, vector<1x128xf32>
    tpu.vector_store %arg10[%c56, %c0_115], %344 {strides = array<i32>} : memref<64x128xf32, #tpu.memory_space<vmem>>, vector<1x128xf32>,
    %c57_i32 = arith.constant 57 : i32
    %346 = arith.addi %0, %c57_i32 : i32
    %347 = arith.index_cast %346 : i32 to index
    %348 = memref.load %arg1[%347] : memref<64xi32, #tpu.memory_space<smem>>
    %349 = arith.index_cast %348 : i32 to index
    %c0_116 = arith.constant 0 : index
    %350 = vector.load %arg2[%349, %c0_116] : memref<128x128xf32, #tpu.memory_space<vmem>>, vector<1x128xf32>
    %c57 = arith.constant 57 : index
    %c0_117 = arith.constant 0 : index
    %351 = vector.load %arg10[%c57, %c0_117] : memref<64x128xf32, #tpu.memory_space<vmem>>, vector<1x128xf32>
    tpu.vector_store %arg10[%c57, %c0_117], %350 {strides = array<i32>} : memref<64x128xf32, #tpu.memory_space<vmem>>, vector<1x128xf32>,
    %c58_i32 = arith.constant 58 : i32
    %352 = arith.addi %0, %c58_i32 : i32
    %353 = arith.index_cast %352 : i32 to index
    %354 = memref.load %arg1[%353] : memref<64xi32, #tpu.memory_space<smem>>
    %355 = arith.index_cast %354 : i32 to index
    %c0_118 = arith.constant 0 : index
    %356 = vector.load %arg2[%355, %c0_118] : memref<128x128xf32, #tpu.memory_space<vmem>>, vector<1x128xf32>
    %c58 = arith.constant 58 : index
    %c0_119 = arith.constant 0 : index
    %357 = vector.load %arg10[%c58, %c0_119] : memref<64x128xf32, #tpu.memory_space<vmem>>, vector<1x128xf32>
    tpu.vector_store %arg10[%c58, %c0_119], %356 {strides = array<i32>} : memref<64x128xf32, #tpu.memory_space<vmem>>, vector<1x128xf32>,
    %c59_i32 = arith.constant 59 : i32
    %358 = arith.addi %0, %c59_i32 : i32
    %359 = arith.index_cast %358 : i32 to index
    %360 = memref.load %arg1[%359] : memref<64xi32, #tpu.memory_space<smem>>
    %361 = arith.index_cast %360 : i32 to index
    %c0_120 = arith.constant 0 : index
    %362 = vector.load %arg2[%361, %c0_120] : memref<128x128xf32, #tpu.memory_space<vmem>>, vector<1x128xf32>
    %c59 = arith.constant 59 : index
    %c0_121 = arith.constant 0 : index
    %363 = vector.load %arg10[%c59, %c0_121] : memref<64x128xf32, #tpu.memory_space<vmem>>, vector<1x128xf32>
    tpu.vector_store %arg10[%c59, %c0_121], %362 {strides = array<i32>} : memref<64x128xf32, #tpu.memory_space<vmem>>, vector<1x128xf32>,
    %c60_i32 = arith.constant 60 : i32
    %364 = arith.addi %0, %c60_i32 : i32
    %365 = arith.index_cast %364 : i32 to index
    %366 = memref.load %arg1[%365] : memref<64xi32, #tpu.memory_space<smem>>
    %367 = arith.index_cast %366 : i32 to index
    %c0_122 = arith.constant 0 : index
    %368 = vector.load %arg2[%367, %c0_122] : memref<128x128xf32, #tpu.memory_space<vmem>>, vector<1x128xf32>
    %c60 = arith.constant 60 : index
    %c0_123 = arith.constant 0 : index
    %369 = vector.load %arg10[%c60, %c0_123] : memref<64x128xf32, #tpu.memory_space<vmem>>, vector<1x128xf32>
    tpu.vector_store %arg10[%c60, %c0_123], %368 {strides = array<i32>} : memref<64x128xf32, #tpu.memory_space<vmem>>, vector<1x128xf32>,
    %c61_i32 = arith.constant 61 : i32
    %370 = arith.addi %0, %c61_i32 : i32
    %371 = arith.index_cast %370 : i32 to index
    %372 = memref.load %arg1[%371] : memref<64xi32, #tpu.memory_space<smem>>
    %373 = arith.index_cast %372 : i32 to index
    %c0_124 = arith.constant 0 : index
    %374 = vector.load %arg2[%373, %c0_124] : memref<128x128xf32, #tpu.memory_space<vmem>>, vector<1x128xf32>
    %c61 = arith.constant 61 : index
    %c0_125 = arith.constant 0 : index
    %375 = vector.load %arg10[%c61, %c0_125] : memref<64x128xf32, #tpu.memory_space<vmem>>, vector<1x128xf32>
    tpu.vector_store %arg10[%c61, %c0_125], %374 {strides = array<i32>} : memref<64x128xf32, #tpu.memory_space<vmem>>, vector<1x128xf32>,
    %c62_i32 = arith.constant 62 : i32
    %376 = arith.addi %0, %c62_i32 : i32
    %377 = arith.index_cast %376 : i32 to index
    %378 = memref.load %arg1[%377] : memref<64xi32, #tpu.memory_space<smem>>
    %379 = arith.index_cast %378 : i32 to index
    %c0_126 = arith.constant 0 : index
    %380 = vector.load %arg2[%379, %c0_126] : memref<128x128xf32, #tpu.memory_space<vmem>>, vector<1x128xf32>
    %c62 = arith.constant 62 : index
    %c0_127 = arith.constant 0 : index
    %381 = vector.load %arg10[%c62, %c0_127] : memref<64x128xf32, #tpu.memory_space<vmem>>, vector<1x128xf32>
    tpu.vector_store %arg10[%c62, %c0_127], %380 {strides = array<i32>} : memref<64x128xf32, #tpu.memory_space<vmem>>, vector<1x128xf32>,
    %c63_i32 = arith.constant 63 : i32
    %382 = arith.addi %0, %c63_i32 : i32
    %383 = arith.index_cast %382 : i32 to index
    %384 = memref.load %arg1[%383] : memref<64xi32, #tpu.memory_space<smem>>
    %385 = arith.index_cast %384 : i32 to index
    %c0_128 = arith.constant 0 : index
    %386 = vector.load %arg2[%385, %c0_128] : memref<128x128xf32, #tpu.memory_space<vmem>>, vector<1x128xf32>
    %c63 = arith.constant 63 : index
    %c0_129 = arith.constant 0 : index
    %387 = vector.load %arg10[%c63, %c0_129] : memref<64x128xf32, #tpu.memory_space<vmem>>, vector<1x128xf32>
    tpu.vector_store %arg10[%c63, %c0_129], %386 {strides = array<i32>} : memref<64x128xf32, #tpu.memory_space<vmem>>, vector<1x128xf32>,
    %c0_130 = arith.constant 0 : index
    %c0_131 = arith.constant 0 : index
    %388 = vector.load %arg11[%c0_130, %c0_131] : memref<8x128xf32, #tpu.memory_space<vmem>>, vector<8x128xf32>
    %c0_132 = arith.constant 0 : index
    %c0_133 = arith.constant 0 : index
    %389 = vector.load %arg10[%c0_132, %c0_133] : memref<64x128xf32, #tpu.memory_space<vmem>>, vector<8x128xf32>
    %c0_134 = arith.constant 0 : index
    %c0_135 = arith.constant 0 : index
    %390 = vector.load %arg3[%c0_134, %c0_135] : memref<128x128xf32, #tpu.memory_space<vmem>>, vector<128x128xf32>
    %cst = arith.constant dense<0.000000e+00> : vector<8x128xf32>
    %391 = tpu.matmul %388, %390, %cst {dimension_numbers = #tpu.dot_dimension_numbers<[1], [0], [0], [1], [0, 0, 1, 1], [], []>} : vector<8x128xf32>, vector<128x128xf32>, vector<8x128xf32> -> vector<8x128xf32>
    %392 = arith.addf %389, %391 : vector<8x128xf32>
    %c0_136 = arith.constant 0 : index
    %c0_137 = arith.constant 0 : index
    %393 = vector.load %arg4[%c0_136, %c0_137] : memref<1x128xf32, #tpu.memory_space<vmem>>, vector<1x128xf32>
    %394 = vector.broadcast %393 : vector<1x128xf32> to vector<8x128xf32>
    %395 = arith.addf %392, %394 : vector<8x128xf32>
    %396 = math.tanh %395 : vector<8x128xf32>
    %c0_138 = arith.constant 0 : index
    %c0_139 = arith.constant 0 : index
    %397 = vector.load %arg10[%c0_138, %c0_139] : memref<64x128xf32, #tpu.memory_space<vmem>>, vector<8x128xf32>
    tpu.vector_store %arg10[%c0_138, %c0_139], %396 {strides = array<i32>} : memref<64x128xf32, #tpu.memory_space<vmem>>, vector<8x128xf32>,
    %c8_140 = arith.constant 8 : index
    %c0_141 = arith.constant 0 : index
    %398 = vector.load %arg10[%c8_140, %c0_141] : memref<64x128xf32, #tpu.memory_space<vmem>>, vector<8x128xf32>
    %c0_142 = arith.constant 0 : index
    %c0_143 = arith.constant 0 : index
    %399 = vector.load %arg3[%c0_142, %c0_143] : memref<128x128xf32, #tpu.memory_space<vmem>>, vector<128x128xf32>
    %cst_144 = arith.constant dense<0.000000e+00> : vector<8x128xf32>
    %400 = tpu.matmul %396, %399, %cst_144 {dimension_numbers = #tpu.dot_dimension_numbers<[1], [0], [0], [1], [0, 0, 1, 1], [], []>} : vector<8x128xf32>, vector<128x128xf32>, vector<8x128xf32> -> vector<8x128xf32>
    %401 = arith.addf %398, %400 : vector<8x128xf32>
    %c0_145 = arith.constant 0 : index
    %c0_146 = arith.constant 0 : index
    %402 = vector.load %arg4[%c0_145, %c0_146] : memref<1x128xf32, #tpu.memory_space<vmem>>, vector<1x128xf32>
    %403 = vector.broadcast %402 : vector<1x128xf32> to vector<8x128xf32>
    %404 = arith.addf %401, %403 : vector<8x128xf32>
    %405 = math.tanh %404 : vector<8x128xf32>
    %c8_147 = arith.constant 8 : index
    %c0_148 = arith.constant 0 : index
    %406 = vector.load %arg10[%c8_147, %c0_148] : memref<64x128xf32, #tpu.memory_space<vmem>>, vector<8x128xf32>
    tpu.vector_store %arg10[%c8_147, %c0_148], %405 {strides = array<i32>} : memref<64x128xf32, #tpu.memory_space<vmem>>, vector<8x128xf32>,
    %c16_149 = arith.constant 16 : index
    %c0_150 = arith.constant 0 : index
    %407 = vector.load %arg10[%c16_149, %c0_150] : memref<64x128xf32, #tpu.memory_space<vmem>>, vector<8x128xf32>
    %c0_151 = arith.constant 0 : index
    %c0_152 = arith.constant 0 : index
    %408 = vector.load %arg3[%c0_151, %c0_152] : memref<128x128xf32, #tpu.memory_space<vmem>>, vector<128x128xf32>
    %cst_153 = arith.constant dense<0.000000e+00> : vector<8x128xf32>
    %409 = tpu.matmul %405, %408, %cst_153 {dimension_numbers = #tpu.dot_dimension_numbers<[1], [0], [0], [1], [0, 0, 1, 1], [], []>} : vector<8x128xf32>, vector<128x128xf32>, vector<8x128xf32> -> vector<8x128xf32>
    %410 = arith.addf %407, %409 : vector<8x128xf32>
    %c0_154 = arith.constant 0 : index
    %c0_155 = arith.constant 0 : index
    %411 = vector.load %arg4[%c0_154, %c0_155] : memref<1x128xf32, #tpu.memory_space<vmem>>, vector<1x128xf32>
    %412 = vector.broadcast %411 : vector<1x128xf32> to vector<8x128xf32>
    %413 = arith.addf %410, %412 : vector<8x128xf32>
    %414 = math.tanh %413 : vector<8x128xf32>
    %c16_156 = arith.constant 16 : index
    %c0_157 = arith.constant 0 : index
    %415 = vector.load %arg10[%c16_156, %c0_157] : memref<64x128xf32, #tpu.memory_space<vmem>>, vector<8x128xf32>
    tpu.vector_store %arg10[%c16_156, %c0_157], %414 {strides = array<i32>} : memref<64x128xf32, #tpu.memory_space<vmem>>, vector<8x128xf32>,
    %c24_158 = arith.constant 24 : index
    %c0_159 = arith.constant 0 : index
    %416 = vector.load %arg10[%c24_158, %c0_159] : memref<64x128xf32, #tpu.memory_space<vmem>>, vector<8x128xf32>
    %c0_160 = arith.constant 0 : index
    %c0_161 = arith.constant 0 : index
    %417 = vector.load %arg3[%c0_160, %c0_161] : memref<128x128xf32, #tpu.memory_space<vmem>>, vector<128x128xf32>
    %cst_162 = arith.constant dense<0.000000e+00> : vector<8x128xf32>
    %418 = tpu.matmul %414, %417, %cst_162 {dimension_numbers = #tpu.dot_dimension_numbers<[1], [0], [0], [1], [0, 0, 1, 1], [], []>} : vector<8x128xf32>, vector<128x128xf32>, vector<8x128xf32> -> vector<8x128xf32>
    %419 = arith.addf %416, %418 : vector<8x128xf32>
    %c0_163 = arith.constant 0 : index
    %c0_164 = arith.constant 0 : index
    %420 = vector.load %arg4[%c0_163, %c0_164] : memref<1x128xf32, #tpu.memory_space<vmem>>, vector<1x128xf32>
    %421 = vector.broadcast %420 : vector<1x128xf32> to vector<8x128xf32>
    %422 = arith.addf %419, %421 : vector<8x128xf32>
    %423 = math.tanh %422 : vector<8x128xf32>
    %c24_165 = arith.constant 24 : index
    %c0_166 = arith.constant 0 : index
    %424 = vector.load %arg10[%c24_165, %c0_166] : memref<64x128xf32, #tpu.memory_space<vmem>>, vector<8x128xf32>
    tpu.vector_store %arg10[%c24_165, %c0_166], %423 {strides = array<i32>} : memref<64x128xf32, #tpu.memory_space<vmem>>, vector<8x128xf32>,
    %c32_167 = arith.constant 32 : index
    %c0_168 = arith.constant 0 : index
    %425 = vector.load %arg10[%c32_167, %c0_168] : memref<64x128xf32, #tpu.memory_space<vmem>>, vector<8x128xf32>
    %c0_169 = arith.constant 0 : index
    %c0_170 = arith.constant 0 : index
    %426 = vector.load %arg3[%c0_169, %c0_170] : memref<128x128xf32, #tpu.memory_space<vmem>>, vector<128x128xf32>
    %cst_171 = arith.constant dense<0.000000e+00> : vector<8x128xf32>
    %427 = tpu.matmul %423, %426, %cst_171 {dimension_numbers = #tpu.dot_dimension_numbers<[1], [0], [0], [1], [0, 0, 1, 1], [], []>} : vector<8x128xf32>, vector<128x128xf32>, vector<8x128xf32> -> vector<8x128xf32>
    %428 = arith.addf %425, %427 : vector<8x128xf32>
    %c0_172 = arith.constant 0 : index
    %c0_173 = arith.constant 0 : index
    %429 = vector.load %arg4[%c0_172, %c0_173] : memref<1x128xf32, #tpu.memory_space<vmem>>, vector<1x128xf32>
    %430 = vector.broadcast %429 : vector<1x128xf32> to vector<8x128xf32>
    %431 = arith.addf %428, %430 : vector<8x128xf32>
    %432 = math.tanh %431 : vector<8x128xf32>
    %c32_174 = arith.constant 32 : index
    %c0_175 = arith.constant 0 : index
    %433 = vector.load %arg10[%c32_174, %c0_175] : memref<64x128xf32, #tpu.memory_space<vmem>>, vector<8x128xf32>
    tpu.vector_store %arg10[%c32_174, %c0_175], %432 {strides = array<i32>} : memref<64x128xf32, #tpu.memory_space<vmem>>, vector<8x128xf32>,
    %c40_176 = arith.constant 40 : index
    %c0_177 = arith.constant 0 : index
    %434 = vector.load %arg10[%c40_176, %c0_177] : memref<64x128xf32, #tpu.memory_space<vmem>>, vector<8x128xf32>
    %c0_178 = arith.constant 0 : index
    %c0_179 = arith.constant 0 : index
    %435 = vector.load %arg3[%c0_178, %c0_179] : memref<128x128xf32, #tpu.memory_space<vmem>>, vector<128x128xf32>
    %cst_180 = arith.constant dense<0.000000e+00> : vector<8x128xf32>
    %436 = tpu.matmul %432, %435, %cst_180 {dimension_numbers = #tpu.dot_dimension_numbers<[1], [0], [0], [1], [0, 0, 1, 1], [], []>} : vector<8x128xf32>, vector<128x128xf32>, vector<8x128xf32> -> vector<8x128xf32>
    %437 = arith.addf %434, %436 : vector<8x128xf32>
    %c0_181 = arith.constant 0 : index
    %c0_182 = arith.constant 0 : index
    %438 = vector.load %arg4[%c0_181, %c0_182] : memref<1x128xf32, #tpu.memory_space<vmem>>, vector<1x128xf32>
    %439 = vector.broadcast %438 : vector<1x128xf32> to vector<8x128xf32>
    %440 = arith.addf %437, %439 : vector<8x128xf32>
    %441 = math.tanh %440 : vector<8x128xf32>
    %c40_183 = arith.constant 40 : index
    %c0_184 = arith.constant 0 : index
    %442 = vector.load %arg10[%c40_183, %c0_184] : memref<64x128xf32, #tpu.memory_space<vmem>>, vector<8x128xf32>
    tpu.vector_store %arg10[%c40_183, %c0_184], %441 {strides = array<i32>} : memref<64x128xf32, #tpu.memory_space<vmem>>, vector<8x128xf32>,
    %c48_185 = arith.constant 48 : index
    %c0_186 = arith.constant 0 : index
    %443 = vector.load %arg10[%c48_185, %c0_186] : memref<64x128xf32, #tpu.memory_space<vmem>>, vector<8x128xf32>
    %c0_187 = arith.constant 0 : index
    %c0_188 = arith.constant 0 : index
    %444 = vector.load %arg3[%c0_187, %c0_188] : memref<128x128xf32, #tpu.memory_space<vmem>>, vector<128x128xf32>
    %cst_189 = arith.constant dense<0.000000e+00> : vector<8x128xf32>
    %445 = tpu.matmul %441, %444, %cst_189 {dimension_numbers = #tpu.dot_dimension_numbers<[1], [0], [0], [1], [0, 0, 1, 1], [], []>} : vector<8x128xf32>, vector<128x128xf32>, vector<8x128xf32> -> vector<8x128xf32>
    %446 = arith.addf %443, %445 : vector<8x128xf32>
    %c0_190 = arith.constant 0 : index
    %c0_191 = arith.constant 0 : index
    %447 = vector.load %arg4[%c0_190, %c0_191] : memref<1x128xf32, #tpu.memory_space<vmem>>, vector<1x128xf32>
    %448 = vector.broadcast %447 : vector<1x128xf32> to vector<8x128xf32>
    %449 = arith.addf %446, %448 : vector<8x128xf32>
    %450 = math.tanh %449 : vector<8x128xf32>
    %c48_192 = arith.constant 48 : index
    %c0_193 = arith.constant 0 : index
    %451 = vector.load %arg10[%c48_192, %c0_193] : memref<64x128xf32, #tpu.memory_space<vmem>>, vector<8x128xf32>
    tpu.vector_store %arg10[%c48_192, %c0_193], %450 {strides = array<i32>} : memref<64x128xf32, #tpu.memory_space<vmem>>, vector<8x128xf32>,
    %c56_194 = arith.constant 56 : index
    %c0_195 = arith.constant 0 : index
    %452 = vector.load %arg10[%c56_194, %c0_195] : memref<64x128xf32, #tpu.memory_space<vmem>>, vector<8x128xf32>
    %c0_196 = arith.constant 0 : index
    %c0_197 = arith.constant 0 : index
    %453 = vector.load %arg3[%c0_196, %c0_197] : memref<128x128xf32, #tpu.memory_space<vmem>>, vector<128x128xf32>
    %cst_198 = arith.constant dense<0.000000e+00> : vector<8x128xf32>
    %454 = tpu.matmul %450, %453, %cst_198 {dimension_numbers = #tpu.dot_dimension_numbers<[1], [0], [0], [1], [0, 0, 1, 1], [], []>} : vector<8x128xf32>, vector<128x128xf32>, vector<8x128xf32> -> vector<8x128xf32>
    %455 = arith.addf %452, %454 : vector<8x128xf32>
    %c0_199 = arith.constant 0 : index
    %c0_200 = arith.constant 0 : index
    %456 = vector.load %arg4[%c0_199, %c0_200] : memref<1x128xf32, #tpu.memory_space<vmem>>, vector<1x128xf32>
    %457 = vector.broadcast %456 : vector<1x128xf32> to vector<8x128xf32>
    %458 = arith.addf %455, %457 : vector<8x128xf32>
    %459 = math.tanh %458 : vector<8x128xf32>
    %c56_201 = arith.constant 56 : index
    %c0_202 = arith.constant 0 : index
    %460 = vector.load %arg10[%c56_201, %c0_202] : memref<64x128xf32, #tpu.memory_space<vmem>>, vector<8x128xf32>
    tpu.vector_store %arg10[%c56_201, %c0_202], %459 {strides = array<i32>} : memref<64x128xf32, #tpu.memory_space<vmem>>, vector<8x128xf32>,
    %c0_203 = arith.constant 0 : index
    %c0_204 = arith.constant 0 : index
    %461 = vector.load %arg11[%c0_203, %c0_204] : memref<8x128xf32, #tpu.memory_space<vmem>>, vector<8x128xf32>
    tpu.vector_store %arg11[%c0_203, %c0_204], %459 {strides = array<i32>} : memref<8x128xf32, #tpu.memory_space<vmem>>, vector<8x128xf32>,
    %c0_205 = arith.constant 0 : index
    %c0_206 = arith.constant 0 : index
    %462 = vector.load %arg9[%c0_205, %c0_206] : memref<8x128xf32, #tpu.memory_space<vmem>>, vector<8x128xf32>
    tpu.vector_store %arg9[%c0_205, %c0_206], %459 {strides = array<i32>} : memref<8x128xf32, #tpu.memory_space<vmem>>, vector<8x128xf32>,
    %c0_207 = arith.constant 0 : index
    %c0_208 = arith.constant 0 : index
    %463 = vector.load %arg10[%c0_207, %c0_208] : memref<64x128xf32, #tpu.memory_space<vmem>>, vector<64x128xf32>
    %c0_209 = arith.constant 0 : index
    %c0_210 = arith.constant 0 : index
    %464 = vector.load %arg5[%c0_209, %c0_210] : memref<128x128xf32, #tpu.memory_space<vmem>>, vector<128x128xf32>
    %cst_211 = arith.constant dense<0.000000e+00> : vector<64x128xf32>
    %465 = tpu.matmul %463, %464, %cst_211 {dimension_numbers = #tpu.dot_dimension_numbers<[1], [0], [0], [1], [0, 0, 1, 1], [], []>} : vector<64x128xf32>, vector<128x128xf32>, vector<64x128xf32> -> vector<64x128xf32>
    %c0_212 = arith.constant 0 : index
    %c0_213 = arith.constant 0 : index
    %466 = vector.load %arg6[%c0_212, %c0_213] : memref<1x128xf32, #tpu.memory_space<vmem>>, vector<1x128xf32>
    %467 = vector.broadcast %466 : vector<1x128xf32> to vector<64x128xf32>
    %468 = arith.addf %465, %467 : vector<64x128xf32>
    %c0_214 = arith.constant 0 : index
    %c0_215 = arith.constant 0 : index
    %469 = vector.load %arg8[%c0_214, %c0_215] : memref<64x128xf32, #tpu.memory_space<vmem>>, vector<64x128xf32>
    tpu.vector_store %arg8[%c0_214, %c0_215], %468 {strides = array<i32>} : memref<64x128xf32, #tpu.memory_space<vmem>>, vector<64x128xf32>,
    return
  }
  func.func @transform_0(%arg0: i32, %arg1: memref<64xi32, #tpu.memory_space<smem>>) -> (i32, i32) {
    %c0_i32 = arith.constant 0 : i32
    %c0_i32_0 = arith.constant 0 : i32
    %c0_i32_1 = arith.constant 0 : i32
    return %c0_i32, %c0_i32_0 : i32, i32
  }
  func.func @transform_1(%arg0: i32, %arg1: memref<64xi32, #tpu.memory_space<smem>>) -> (i32, i32) {
    %c0_i32 = arith.constant 0 : i32
    %c0_i32_0 = arith.constant 0 : i32
    %c0_i32_1 = arith.constant 0 : i32
    return %c0_i32, %c0_i32_0 : i32, i32
  }
  func.func @transform_2(%arg0: i32, %arg1: memref<64xi32, #tpu.memory_space<smem>>) -> (i32, i32) {
    %c0_i32 = arith.constant 0 : i32
    %c0_i32_0 = arith.constant 0 : i32
    %c0_i32_1 = arith.constant 0 : i32
    return %c0_i32, %c0_i32_0 : i32, i32
  }
  func.func @transform_3(%arg0: i32, %arg1: memref<64xi32, #tpu.memory_space<smem>>) -> (i32, i32) {
    %c0_i32 = arith.constant 0 : i32
    %c0_i32_0 = arith.constant 0 : i32
    %c0_i32_1 = arith.constant 0 : i32
    return %c0_i32, %c0_i32_0 : i32, i32
  }
  func.func @transform_4(%arg0: i32, %arg1: memref<64xi32, #tpu.memory_space<smem>>) -> (i32, i32) {
    %c0_i32 = arith.constant 0 : i32
    %c0_i32_0 = arith.constant 0 : i32
    %c0_i32_1 = arith.constant 0 : i32
    return %c0_i32, %c0_i32_0 : i32, i32
  }
  func.func @transform_5(%arg0: i32, %arg1: memref<64xi32, #tpu.memory_space<smem>>) -> (i32, i32) {
    %c0_i32 = arith.constant 0 : i32
    %c0_i32_0 = arith.constant 0 : i32
    %c0_i32_1 = arith.constant 0 : i32
    return %c0_i32, %c0_i32_0 : i32, i32
  }
  func.func @transform_6(%arg0: i32, %arg1: memref<64xi32, #tpu.memory_space<smem>>) -> (i32, i32) {
    %c0_i32 = arith.constant 0 : i32
    %c0_i32_0 = arith.constant 0 : i32
    return %arg0, %c0_i32 : i32, i32
  }
  func.func @transform_7(%arg0: i32, %arg1: memref<64xi32, #tpu.memory_space<smem>>) -> (i32, i32) {
    %c0_i32 = arith.constant 0 : i32
    %c0_i32_0 = arith.constant 0 : i32
    %c0_i32_1 = arith.constant 0 : i32
    return %c0_i32, %c0_i32_0 : i32, i32
  }
}

</mosaic_0001>

<bundles_post_ra>
// kernel: tpu_custom_call.1
= control target key start
LH: loop header
LB: loop body
LE: loop exit
PB: predicated region body
PF: predicated region fallthrough
CT: control target
= control target key end

     0   :  { %s2726_s0 = inlined_call_operand.hbm [shape: s32[64], index: 0, kind: input, shape index: {}]   ;;  %s2727_s1 = inlined_call_operand.hbm [shape: f32[128,128], index: 1, kind: input, shape index: {}]   ;;  %s2728_s2 = inlined_call_operand.hbm [shape: f32[128,128], index: 2, kind: input, shape index: {}]   ;;  %s2729_s3 = inlined_call_operand.vmem [shape: f32[1,128], index: 3, kind: input, shape index: {}]   ;;  %s2730_s4 = inlined_call_operand.hbm [shape: f32[128,128], index: 4, kind: input, shape index: {}]   ;;  %s2731_s5 = inlined_call_operand.vmem [shape: f32[1,128], index: 5, kind: input, shape index: {}]   ;;  %s2732_s6 = inlined_call_operand.vmem [shape: f32[8,128], index: 6, kind: input, shape index: {}]   ;;  %s2733_s7 = inlined_call_operand.hbm [shape: f32[64,128], index: 7, kind: output, shape index: {0}]   ;;  %s2734_s8 = inlined_call_operand.hbm [shape: f32[8,128], index: 8, kind: output, shape index: {1}]  }
   0x1   :  { %s2233_s29 = scalar_lea.hbm %s2726_s0, 16 }
   0x2   :  { %p2234_p0 = scmp.ne.s32.totalorder %s2726_s0, %s2233_s29  ;;  %p2237_p1 = scmp.lt.u32.totalorder %s2233_s29, %s2726_s0 }
   0x4   :  { %p2239_p2 = pnand %p2237_p1, %p2234_p0 }
   0x6   :  { %2242 = shalt.err (!%p2239_p2)  }
   0x7   :  { %s2363_s12 = smov [#allocation5]  }
   0x8   :  { %15 = dma.hbm_to_smem %s2726_s0, 16, %s2363_s12, [#allocation4] }
   0x9   :  { %2353 = dma.done.wait [#allocation4], 16 }
   0xa   :  { %2354 = vsyncadd [#allocation4], 4294967280 }
   0xb   :  { %17 = sfence }
   0xc   :  { %18 = vsyncpa [#allocation7], 0 }
   0xd   :  { %19 = vsyncpa [#allocation10], 0 }
   0xe   :  { %20 = vsyncpa [#allocation8], 0 }
   0xf   :  { %21 = vsyncpa [#allocation14], 0  ;;  %s2364_s15 = smov [#allocation9]   ;;  %s2365_s17 = smov [#allocation6]  }
  0x10   :  { %s39_s16 = sshll.u32 %s2364_s15, 4  ;;  %s27_s18 = sshll.u32 %s2365_s17, 4  ;;  %s40_s16 = int_to_ptr.vmem [resolvable:$true] %s39_s16  ;;  %s2431_s18 = int_to_ptr.vmem [resolvable:$true] %s27_s18 }
  0x11   :  { %s2243_s21 = scalar_lea.hbm %s2728_s2, 2048 }
  0x12   :  { %p2244_p3 = scmp.ne.s32.totalorder %s2728_s2, %s2243_s21  ;;  %p2247_p4 = scmp.lt.u32.totalorder %s2243_s21, %s2728_s2 }
  0x14   :  { %p2249_p5 = pnand %p2247_p4, %p2244_p3 }
  0x16   :  { %2252 = shalt.err (!%p2249_p5)
}
  0x17   :  { %s2253_s25 = scalar_lea.vmem %s40_s16, 2048  ;;  %p2258_p7 = scmp.lt.s32.totalorder %s40_s16, %s40_s16 }
  0x18   :  { %p2254_p6 = scmp.ne.s32.totalorder %s40_s16, %s2253_s25  ;;  %p2259_p8 = scmp.lt.s32.totalorder %s2253_s25, %s2253_s25 }
  0x1a   :  { %p2260_p9 = por %p2259_p8, %p2258_p7 }
  0x1c   :  { %p2261_p10 = pnand %p2260_p9, %p2254_p6 }
  0x1e   :  { %2264 = shalt.err (!%p2261_p10)
}
  0x1f   :  { %s2366_s26 = smov 128   ;;  %s2367_s27 = smov 8  }
  0x20   :  { %45 = dma.hbm_to_vmem [thread:$0]  %s2728_s2, 2048, %s40_s16, [#allocation10], %s2366_s26, %s2366_s26, %s2367_s27  }
  0x21   :  { %s2265_s10 = scalar_lea.hbm %s2727_s1, 2048 }
  0x22   :  { %p2266_p11 = scmp.ne.s32.totalorder %s2727_s1, %s2265_s10  ;;  %p2269_p12 = scmp.lt.u32.totalorder %s2265_s10, %s2727_s1 }
  0x24   :  { %p2271_p13 = pnand %p2269_p12, %p2266_p11 }
  0x26   :  { %2274 = shalt.err (!%p2271_p13)
}
  0x27   :  { %s2275_s15 = scalar_lea.vmem %s2431_s18, 2048  ;;  %p2280_p1 = scmp.lt.s32.totalorder %s2431_s18, %s2431_s18 }
  0x28   :  { %p2276_p0 = scmp.ne.s32.totalorder %s2431_s18, %s2275_s15  ;;  %p2281_p2 = scmp.lt.s32.totalorder %s2275_s15, %s2275_s15 }
  0x2a   :  { %p2282_p3 = por %p2281_p2, %p2280_p1 }
  0x2c   :  { %p2283_p4 = pnand %p2282_p3, %p2276_p0 }
  0x2e   :  { %2286 = shalt.err (!%p2283_p4)
}
  0x2f   :  { %33 = dma.hbm_to_vmem [thread:$0]  %s2727_s1, 2048, %s2431_s18, [#allocation7], %s2366_s26, %s2366_s26, %s2367_s27  }
  0x30   :  { %s2368_s17 = smov [#allocation11]   ;;  %s2287_s22 = scalar_lea.hbm %s2730_s4, 2048 }
  0x31   :  { %s53_s19 = sshll.u32 %s2368_s17, 4  ;;  %p2288_p5 = scmp.ne.s32.totalorder %s2730_s4, %s2287_s22  ;;  %s54_s19 = int_to_ptr.vmem [resolvable:$true] %s53_s19 }
  0x32   :  { %p2291_p6 = scmp.lt.u32.totalorder %s2287_s22, %s2730_s4 }
  0x34   :  { %p2293_p7 = pnand %p2291_p6, %p2288_p5 }
  0x36   :  { %2296 = shalt.err (!%p2293_p7)
}
  0x37   :  { %s2297_s28 = scalar_lea.vmem %s54_s19, 2048  ;;  %p2302_p9 = scmp.lt.s32.totalorder %s54_s19, %s54_s19 }
  0x38   :  { %p2298_p8 = scmp.ne.s32.totalorder %s54_s19, %s2297_s28  ;;  %p2303_p10 = scmp.lt.s32.totalorder %s2297_s28, %s2297_s28 }
  0x3a   :  { %p2304_p11 = por %p2303_p10, %p2302_p9 }
  0x3c   :  { %p2305_p12 = pnand %p2304_p11, %p2298_p8 }
  0x3e   :  { %2308 = shalt.err (!%p2305_p12)
}
  0x3f   :  { %59 = dma.hbm_to_vmem [thread:$0]  %s2730_s4, 2048, %s54_s19, [#allocation10], %s2366_s26, %s2366_s26, %s2367_s27  }
  0x40   :  { %2355 = dma.done.wait [#allocation7], 2048  }
  0x41   :  { %2356 = vsyncadd [#allocation7], 4294965248 }
  0x42   :  { %2357 = dma.done.wait [#allocation10], 4096  }
  0x43   :  { %2358 = vsyncadd [#allocation10], 4294963200  ;;  %v2369_v0 = vmov 0.0|0.0   ;;  %vm2370_vm0 = vmmov 0   ;;  %v2371_v1 = vmov 0.0   ;;  %s80_s29 = sld [smem:[#allocation5]] }
  0x44   :  { %1982 = vmatprep.subr.bf16.mxu1 %v2369_v0  ;;  %1690 = vmatprep.mubr.msk.f32.mxu1 %vm2370_vm0, %v2371_v1  ;;  %s1426_s30 = sld [smem:[#allocation5 + $0x1]]  ;;  %s1427_s9 = sld [smem:[#allocation5 + $0x2]]  ;;  %v401_v2 = vld [vmem:[#allocation9] sm:$0xff]  ;;  %v402_v3 = vld [vmem:[#allocation9 + $0x8] sm:$0xff]  ;;  %v403_v4 = vld [vmem:[#allocation9 + $0x10] sm:$0xff] }
  0x45   :  { %s1428_s10 = sld [smem:[#allocation5 + $0x3]]  ;;  %2030 = vmatprep.subr.bf16.mxu0 %v2369_v0  ;;  %1760 = vmatprep.mubr.msk.f32.mxu0 %vm2370_vm0, %v2371_v1  ;;  %s2489_s4 = sld [smem:[#allocation5 + $0x4]]  ;;  %v2497_v5 = vpack.c.bf16 %v402_v3, %v401_v2  ;;  %v404_v6 = vld [vmem:[#allocation9 + $0x18] sm:$0xff]  ;;  %v405_v8 = vld [vmem:[#allocation9 + $0x20] sm:$0xff]  ;;  %v406_v9 = vld [vmem:[#allocation9 + $0x28] sm:$0xff] }
  0x46   :  { %s2491_s11 = sld [smem:[#allocation5 + $0x5]]  ;;  %s2493_s12 = sld [smem:[#allocation5 + $0x6]]  ;;  %v2500_v7 = vpack.c.bf16 %v404_v6, %v403_v4  ;;  %v2506_v14 = vpack.c.bf16 %v406_v9, %v405_v8  ;;  %v407_v18 = vld [vmem:[#allocation9 + $0x30] sm:$0xff]  ;;  %v408_v19 = vld [vmem:[#allocation9 + $0x38] sm:$0xff]  ;;  %v409_v22 = vld [vmem:[#allocation9 + $0x40] sm:$0xff] }
  0x47   :  { %s2495_s13 = sld [smem:[#allocation5 + $0x7]]  ;;  %1984 = vmatpush3.bf16.msra.mxu1 %v2497_v5  ;;  %2032 = vmatpush3.bf16.msra.mxu0 %v2497_v5  ;;  %v2516_v21 = vpack.c.bf16 %v408_v19, %v407_v18  ;;  %v410_v23 = vld [vmem:[#allocation9 + $0x48] sm:$0xff]  ;;  %v411_v25 = vld [vmem:[#allocation9 + $0x50] sm:$0xff]  ;;  %v412_v26 = vld [vmem:[#allocation9 + $0x58] sm:$0xff]  ;;  %s1434_s23 = sld [smem:[#allocation5 + $0x9]] }
  0x48   :  { %1985 = vmatprep.subr.bf16.mxu1 %v2369_v0  ;;  %2033 = vmatprep.subr.bf16.mxu0 %v2369_v0  ;;  %v2522_v24 = vpack.c.bf16 %v410_v23, %v409_v22  ;;  %v2528_v27 = vpack.c.bf16 %v412_v26, %v411_v25  ;;  %v413_v28 = vld [vmem:[#allocation9 + $0x60] sm:$0xff]  ;;  %v414_v29 = vld [vmem:[#allocation9 + $0x68] sm:$0xff]  ;;  %v415_v31 = vld [vmem:[#allocation9 + $0x70] sm:$0xff]  ;;  %s1435_s24 = sld [smem:[#allocation5 + $0xa]]  ;;  %s1436_s25 = sld [smem:[#allocation5 + $0xb]] }
  0x49   :  { %s81_s14 = scalar_lea.vmem [#allocation6], %s80_s29  ;;  %v2534_v30 = vpack.c.bf16 %v414_v29, %v413_v28  ;;  %v416_v32 = vld [vmem:[#allocation9 + $0x78] sm:$0xff]  ;;  %s1437_s28 = sld [smem:[#allocation5 + $0xc]] }
  0x4a   :  { %v82_v10 = vld [vmem:[%s81_s14] sm:$0x1]  ;;  %s86_s15 = scalar_lea.vmem [#allocation6], %s1426_s30  ;;  %s91_s2 = scalar_lea.vmem [#allocation6], %s1427_s9  ;;  %v2540_v33 = vpack.c.bf16 %v416_v32, %v415_v31 }
  0x4b   :  { %83 = vst [vmem:[#allocation2] sm:$0x1] %v82_v10  ;;  %v87_v11 = vld [vmem:[%s86_s15] sm:$0x1]  ;;  %s96_s16 = scalar_lea.vmem [#allocation6], %s1428_s10  ;;  %1987 = vmatpush3.bf16.msra.mxu1 %v2500_v7  ;;  %s101_s17 = scalar_lea.vmem [#allocation6], %s2489_s4  ;;  %2035 = vmatpush3.bf16.msra.mxu0 %v2500_v7 }
  0x4c   :  { %v92_v12 = vld [vmem:[%s91_s2] sm:$0x1]  ;;  %88 = vst [vmem:[#allocation2 + $0x1] sm:$0x1] %v87_v11  ;;  %s106_s19 = scalar_lea.vmem [#allocation6], %s2491_s11  ;;  %s111_s20 = scalar_lea.vmem [#allocation6], %s2493_s12  ;;  %1988 = vmatprep.subr.bf16.mxu1 %v2369_v0  ;;  %2036 = vmatprep.subr.bf16.mxu0 %v2369_v0 }
  0x4d   :  { %v97_v13 = vld [vmem:[%s96_s16] sm:$0x1]  ;;  %93 = vst [vmem:[#allocation2 + $0x2] sm:$0x1] %v92_v12  ;;  %s116_s21 = scalar_lea.vmem [#allocation6], %s2495_s13  ;;  %s1438_s1 = sld [smem:[#allocation5 + $0xd]] }
  0x4e   :  { %98 = vst [vmem:[#allocation2 + $0x3] sm:$0x1] %v97_v13  ;;  %v102_v15 = vld [vmem:[%s101_s17] sm:$0x1]  ;;  %s1439_s18 = sld [smem:[#allocation5 + $0xe]]  ;;  %s1440_s29 = sld [smem:[#allocation5 + $0xf]] }
  0x4f   :  { %v107_v16 = vld [vmem:[%s106_s19] sm:$0x1]  ;;  %103 = vst [vmem:[#allocation2 + $0x4] sm:$0x1] %v102_v15  ;;  %1990 = vmatpush3.bf16.msra.mxu1 %v2506_v14  ;;  %2038 = vmatpush3.bf16.msra.mxu0 %v2506_v14  ;;  %s126_s9 = scalar_lea.vmem [#allocation6], %s1434_s23  ;;  %s131_s10 = scalar_lea.vmem [#allocation6], %s1435_s24 }
  0x50   :  { %v112_v17 = vld [vmem:[%s111_s20] sm:$0x1]  ;;  %108 = vst [vmem:[#allocation2 + $0x5] sm:$0x1] %v107_v16  ;;  %1991 = vmatprep.subr.bf16.mxu1 %v2369_v0  ;;  %2039 = vmatprep.subr.bf16.mxu0 %v2369_v0  ;;  %s136_s4 = scalar_lea.vmem [#allocation6], %s1436_s25  ;;  %s141_s11 = scalar_lea.vmem [#allocation6], %s1437_s28 }
  0x51   :  { %113 = vst [vmem:[#allocation2 + $0x6] sm:$0x1] %v112_v17  ;;  %v117_v20 = vld [vmem:[%s116_s21] sm:$0x1]  ;;  %s1441_s16 = sld [smem:[#allocation5 + $0x10]]  ;;  %s1442_s17 = sld [smem:[#allocation5 + $0x11]] }
  0x52   :  { %118 = vst [vmem:[#allocation2 + $0x7] sm:$0x1] %v117_v20  ;;  %v78_v34 = vld [vmem:[%s2732_s6] sm:$0xff]  ;;  %s1433_s6 = sld [smem:[#allocation5 + $0x8]]  ;;  %s1443_s19 = sld [smem:[#allocation5 + $0x12]] }
  0x53   :  { %1993 = vmatpush3.bf16.msra.mxu1 %v2516_v21  ;;  %2041 = vmatpush3.bf16.msra.mxu0 %v2516_v21  ;;  %v127_v36 = vld [vmem:[%s126_s9] sm:$0x1]  ;;  %s146_s12 = scalar_lea.vmem [#allocation6], %s1438_s1  ;;  %s1444_s20 = sld [smem:[#allocation5 + $0x13]] }
  0x54   :  { %1994 = vmatprep.subr.bf16.mxu1 %v2369_v0  ;;  %2042 = vmatprep.subr.bf16.mxu0 %v2369_v0  ;;  %128 = vst [vmem:[#allocation2 + $0x9] sm:$0x1] %v127_v36  ;;  %v132_v37 = vld [vmem:[%s131_s10] sm:$0x1]  ;;  %s151_s13 = scalar_lea.vmem [#allocation6], %s1439_s18  ;;  %s156_s14 = scalar_lea.vmem [#allocation6], %s1440_s29 }
  0x55   :  { %v137_v38 = vld [vmem:[%s136_s4] sm:$0x1]  ;;  %133 = vst [vmem:[#allocation2 + $0xa] sm:$0x1] %v132_v37  ;;  %s1445_s21 = sld [smem:[#allocation5 + $0x14]]  ;;  %s1446_s22 = sld [smem:[#allocation5 + $0x15]] }
  0x56   :  { %138 = vst [vmem:[#allocation2 + $0xb] sm:$0x1] %v137_v38  ;;  %v142_v39 = vld [vmem:[%s141_s11] sm:$0x1]  ;;  %s1447_s0 = sld [smem:[#allocation5 + $0x16]]  ;;  %s1449_s9 = sld [smem:[#allocation5 + $0x18]] }
  0x57   :  { %1996 = vmatpush3.bf16.msra.mxu1 %v2522_v24  ;;  %2044 = vmatpush3.bf16.msra.mxu0 %v2522_v24  ;;  %v147_v40 = vld [vmem:[%s146_s12] sm:$0x1]  ;;  %143 = vst [vmem:[#allocation2 + $0xc] sm:$0x1] %v142_v39  ;;  %s161_s23 = scalar_lea.vmem [#allocation6], %s1441_s16  ;;  %s166_s24 = scalar_lea.vmem [#allocation6], %s1442_s17 }
  0x58   :  { %1997 = vmatprep.subr.bf16.mxu1 %v2369_v0  ;;  %2045 = vmatprep.subr.bf16.mxu0 %v2369_v0  ;;  %s121_s30 = scalar_lea.vmem [#allocation6], %s1433_s6  ;;  %148 = vst [vmem:[#allocation2 + $0xd] sm:$0x1] %v147_v40  ;;  %v152_v41 = vld [vmem:[%s151_s13] sm:$0x1]  ;;  %s1448_s6 = sld [smem:[#allocation5 + $0x17]] }
  0x59   :  { %v122_v35 = vld [vmem:[%s121_s30] sm:$0x1]  ;;  %153 = vst [vmem:[#allocation2 + $0xe] sm:$0x1] %v152_v41  ;;  %v400_v43 = vld [vmem:[#allocation2] sm:$0xff]  ;;  %s171_s25 = scalar_lea.vmem [#allocation6], %s1443_s19 }
  0x5a   :  { %123 = vst [vmem:[#allocation2 + $0x8] sm:$0x1] %v122_v35  ;;  %v157_v42 = vld [vmem:[%s156_s14] sm:$0x1]  ;;  %s176_s28 = scalar_lea.vmem [#allocation6], %s1444_s20  ;;  %s1450_s10 = sld [smem:[#allocation5 + $0x19]] }
  0x5b   :  { %1999 = vmatpush3.bf16.msra.mxu1 %v2528_v27  ;;  %2047 = vmatpush3.bf16.msra.mxu0 %v2528_v27  ;;  %158 = vst [vmem:[#allocation2 + $0xf] sm:$0x1] %v157_v42  ;;  %v2573_v45 = vld [vmem:[%s2729_s3] ss:$0 sm:$0xff]  ;;  %s181_s1 = scalar_lea.vmem [#allocation6], %s1445_s21  ;;  %s186_s18 = scalar_lea.vmem [#allocation6], %s1446_s22 }
  0x5c   :  { %2000 = vmatprep.subr.bf16.mxu1 %v2369_v0  ;;  %2048 = vmatprep.subr.bf16.mxu0 %v2369_v0  ;;  %v162_v50 = vld [vmem:[%s161_s23] sm:$0x1]  ;;  %s191_s29 = scalar_lea.vmem [#allocation6], %s1447_s0  ;;  %s1451_s4 = sld [smem:[#allocation5 + $0x1a]] }
  0x5d   :  { %v167_v51 = vld [vmem:[%s166_s24] sm:$0x1]  ;;  %163 = vst [vmem:[#allocation2 + $0x10] sm:$0x1] %v162_v50  ;;  %s1452_s11 = sld [smem:[#allocation5 + $0x1b]]  ;;  %s1453_s12 = sld [smem:[#allocation5 + $0x1c]] }
  0x5e   :  { %168 = vst [vmem:[#allocation2 + $0x11] sm:$0x1] %v167_v51  ;;  %v172_v52 = vld [vmem:[%s171_s25] sm:$0x1]  ;;  %s196_s30 = scalar_lea.vmem [#allocation6], %s1448_s6  ;;  %s1454_s13 = sld [smem:[#allocation5 + $0x1d]] }
  0x5f   :  { %2002 = vmatpush3.bf16.msra.mxu1 %v2534_v30  ;;  %2050 = vmatpush3.bf16.msra.mxu0 %v2534_v30  ;;  %v177_v53 = vld [vmem:[%s176_s28] sm:$0x1]  ;;  %173 = vst [vmem:[#allocation2 + $0x12] sm:$0x1] %v172_v52  ;;  %s1455_s14 = sld [smem:[#allocation5 + $0x1e]]  ;;  %s1456_s15 = sld [smem:[#allocation5 + $0x1f]] }
  0x60   :  { %2003 = vmatprep.subr.bf16.mxu1 %v2369_v0  ;;  %2051 = vmatprep.subr.bf16.mxu0 %v2369_v0  ;;  %178 = vst [vmem:[#allocation2 + $0x13] sm:$0x1] %v177_v53  ;;  %v182_v54 = vld [vmem:[%s181_s1] sm:$0x1]  ;;  %s201_s2 = scalar_lea.vmem [#allocation6], %s1449_s9  ;;  %s206_s16 = scalar_lea.vmem [#allocation6], %s1450_s10 }
  0x61   :  { %v187_v55 = vld [vmem:[%s186_s18] sm:$0x1]  ;;  %183 = vst [vmem:[#allocation2 + $0x14] sm:$0x1] %v182_v54  ;;  %s1457_s6 = sld [smem:[#allocation5 + $0x20]]  ;;  %s1458_s23 = sld [smem:[#allocation5 + $0x21]] }
  0x62   :  { %188 = vst [vmem:[#allocation2 + $0x15] sm:$0x1] %v187_v55  ;;  %v192_v56 = vld [vmem:[%s191_s29] sm:$0x1]  ;;  %v498_v58 = vld [vmem:[#allocation2 + $0x8] sm:$0xff]  ;;  %s211_s17 = scalar_lea.vmem [#allocation6], %s1451_s4 }
  0x63   :  { %2005 = vmatpush3.bf16.msra.mxu1 %v2540_v33  ;;  %2053 = vmatpush3.bf16.msra.mxu0 %v2540_v33  ;;  %v197_v57 = vld [vmem:[%s196_s30] sm:$0x1]  ;;  %193 = vst [vmem:[#allocation2 + $0x16] sm:$0x1] %v192_v56  ;;  %s216_s19 = scalar_lea.vmem [#allocation6], %s1452_s11  ;;  %s221_s20 = scalar_lea.vmem [#allocation6], %s1453_s12 }
  0x64   :  { %2006 = vmatprep.subr.bf16.mxu1 %v2369_v0  ;;  %2078 = vmatprep.subr.bf16.mxu0 %v2369_v0  ;;  %198 = vst [vmem:[#allocation2 + $0x17] sm:$0x1] %v197_v57  ;;  %v202_v2 = vld [vmem:[%s201_s2] sm:$0x1]  ;;  %s226_s21 = scalar_lea.vmem [#allocation6], %s1454_s13  ;;  %s1459_s24 = sld [smem:[#allocation5 + $0x22]] }
  0x65   :  { %v207_v3 = vld [vmem:[%s206_s16] sm:$0x1]  ;;  %203 = vst [vmem:[#allocation2 + $0x18] sm:$0x1] %v202_v2  ;;  %s231_s22 = scalar_lea.vmem [#allocation6], %s1455_s14  ;;  %s236_s0 = scalar_lea.vmem [#allocation6], %s1456_s15 }
  0x66   :  { %1691 = vmatmul.mubr.f32.vlgmr.msra.gmra.mrb[0].mxu1 %v78_v34  ;;  %208 = vst [vmem:[#allocation2 + $0x19] sm:$0x1] %v207_v3  ;;  %v212_v4 = vld [vmem:[%s211_s17] sm:$0x1]  ;;  %s1460_s25 = sld [smem:[#allocation5 + $0x23]]  ;;  %s1461_s28 = sld [smem:[#allocation5 + $0x24]] }
  0x67   :  { %2008 = vmatpush3.bf16.msra.mxu1 %v2497_v5  ;;  %1725 = vmatprep.mubr.msk.f32.mxu1 %vm2370_vm0, %v2371_v1  ;;  %v217_v6 = vld [vmem:[%s216_s19] sm:$0x1]  ;;  %213 = vst [vmem:[#allocation2 + $0x1a] sm:$0x1] %v212_v4  ;;  %s1462_s1 = sld [smem:[#allocation5 + $0x25]]  ;;  %s1463_s18 = sld [smem:[#allocation5 + $0x26]] }
  0x68   :  { %2009 = vmatprep.subr.bf16.mxu1 %v2369_v0  ;;  %218 = vst [vmem:[#allocation2 + $0x1b] sm:$0x1] %v217_v6  ;;  %v222_v8 = vld [vmem:[%s221_s20] sm:$0x1]  ;;  %s1464_s29 = sld [smem:[#allocation5 + $0x27]]  ;;  %s241_s30 = scalar_lea.vmem [#allocation6], %s1457_s6 }
  0x69   :  { %v227_v9 = vld [vmem:[%s226_s21] sm:$0x1]  ;;  %223 = vst [vmem:[#allocation2 + $0x1c] sm:$0x1] %v222_v8  ;;  %s246_s9 = scalar_lea.vmem [#allocation6], %s1458_s23  ;;  %s1465_s15 = sld [smem:[#allocation5 + $0x28]] }
  0x6a   :  { %228 = vst [vmem:[#allocation2 + $0x1d] sm:$0x1] %v227_v9  ;;  %v232_v10 = vld [vmem:[%s231_s22] sm:$0x1]  ;;  %s251_s10 = scalar_lea.vmem [#allocation6], %s1459_s24  ;;  %s1466_s2 = sld [smem:[#allocation5 + $0x29]] }
  0x6b   :  { %2011 = vmatpush3.bf16.msra.mxu1 %v2500_v7  ;;  %v237_v11 = vld [vmem:[%s236_s0] sm:$0x1]  ;;  %233 = vst [vmem:[#allocation2 + $0x1e] sm:$0x1] %v232_v10  ;;  %v596_v12 = vld [vmem:[#allocation2 + $0x10] sm:$0xff]  ;;  %s1467_s16 = sld [smem:[#allocation5 + $0x2a]] }
  0x6c   :  { %2012 = vmatprep.subr.bf16.mxu1 %v2369_v0  ;;  %238 = vst [vmem:[#allocation2 + $0x1f] sm:$0x1] %v237_v11  ;;  %v242_v19 = vld [vmem:[%s241_s30] sm:$0x1]  ;;  %s256_s4 = scalar_lea.vmem [#allocation6], %s1460_s25  ;;  %s261_s11 = scalar_lea.vmem [#allocation6], %s1461_s28 }
  0x6d   :  { %v247_v20 = vld [vmem:[%s246_s9] sm:$0x1]  ;;  %243 = vst [vmem:[#allocation2 + $0x20] sm:$0x1] %v242_v19  ;;  %s266_s12 = scalar_lea.vmem [#allocation6], %s1462_s1  ;;  %s271_s13 = scalar_lea.vmem [#allocation6], %s1463_s18 }
  0x6e   :  { %248 = vst [vmem:[#allocation2 + $0x21] sm:$0x1] %v247_v20  ;;  %v252_v22 = vld [vmem:[%s251_s10] sm:$0x1]  ;;  %s276_s14 = scalar_lea.vmem [#allocation6], %s1464_s29  ;;  %s1468_s17 = sld [smem:[#allocation5 + $0x2b]] }
  0x6f   :  { %2014 = vmatpush3.bf16.msra.mxu1 %v2506_v14  ;;  %v257_v23 = vld [vmem:[%s256_s4] sm:$0x1]  ;;  %253 = vst [vmem:[#allocation2 + $0x22] sm:$0x1] %v252_v22  ;;  %s1469_s19 = sld [smem:[#allocation5 + $0x2c]]  ;;  %s1470_s20 = sld [smem:[#allocation5 + $0x2d]] }
  0x70   :  { %2015 = vmatprep.subr.bf16.mxu1 %v2369_v0  ;;  %258 = vst [vmem:[#allocation2 + $0x23] sm:$0x1] %v257_v23  ;;  %v262_v25 = vld [vmem:[%s261_s11] sm:$0x1]  ;;  %s1471_s21 = sld [smem:[#allocation5 + $0x2e]]  ;;  %s1472_s22 = sld [smem:[#allocation5 + $0x2f]] }
  0x71   :  { %v267_v26 = vld [vmem:[%s266_s12] sm:$0x1]  ;;  %263 = vst [vmem:[#allocation2 + $0x24] sm:$0x1] %v262_v25  ;;  %s281_s0 = scalar_lea.vmem [#allocation6], %s1465_s15  ;;  %s286_s6 = scalar_lea.vmem [#allocation6], %s1466_s2 }
  0x72   :  { %268 = vst [vmem:[#allocation2 + $0x25] sm:$0x1] %v267_v26  ;;  %v272_v28 = vld [vmem:[%s271_s13] sm:$0x1]  ;;  %s291_s23 = scalar_lea.vmem [#allocation6], %s1467_s16  ;;  %v1088_v50 = vld [vmem:[#allocation9 + $0x8] sm:$0xff] }
  0x73   :  { %2017 = vmatpush3.bf16.msra.mxu1 %v2516_v21  ;;  %v277_v29 = vld [vmem:[%s276_s14] sm:$0x1]  ;;  %273 = vst [vmem:[#allocation2 + $0x26] sm:$0x1] %v272_v28  ;;  %v1089_v51 = vld [vmem:[#allocation9 + $0x10] sm:$0xff]  ;;  %s1473_s29 = sld [smem:[#allocation5 + $0x30]] }
  0x74   :  { %2018 = vmatprep.subr.bf16.mxu1 %v2369_v0  ;;  %278 = vst [vmem:[#allocation2 + $0x27] sm:$0x1] %v277_v29  ;;  %v694_v31 = vld [vmem:[#allocation2 + $0x18] sm:$0xff]  ;;  %s296_s24 = scalar_lea.vmem [#allocation6], %s1468_s17  ;;  %s1474_s30 = sld [smem:[#allocation5 + $0x31]]  ;;  %v1092_v55 = vld [vmem:[#allocation9 + $0x28] sm:$0xff] }
  0x75   :  { %s301_s25 = scalar_lea.vmem [#allocation6], %s1469_s19  ;;  %s306_s28 = scalar_lea.vmem [#allocation6], %s1470_s20  ;;  %v1090_v53 = vld [vmem:[#allocation9 + $0x18] sm:$0xff]  ;;  %v1198_v20 = vld [vmem:[#allocation11 + $0x20] sm:$0xff]  ;;  %v1199_v22 = vld [vmem:[#allocation11 + $0x28] sm:$0xff] }
  0x76   :  { %s311_s1 = scalar_lea.vmem [#allocation6], %s1471_s21  ;;  %s316_s18 = scalar_lea.vmem [#allocation6], %s1472_s22  ;;  %v2154_v54 = vpack.c.bf16 %v1090_v53, %v1089_v51  ;;  %v2182_v23 = vpack.c.bf16 %v1199_v22, %v1198_v20  ;;  %v1200_v25 = vld [vmem:[#allocation11 + $0x30] sm:$0xff]  ;;  %v1201_v26 = vld [vmem:[#allocation11 + $0x38] sm:$0xff]  ;;  %v1202_v28 = vld [vmem:[#allocation11 + $0x40] sm:$0xff] }
  0x77   :  { %2020 = vmatpush3.bf16.msra.mxu1 %v2522_v24  ;;  %s1475_s9 = sld [smem:[#allocation5 + $0x32]]  ;;  %s1476_s10 = sld [smem:[#allocation5 + $0x33]]  ;;  %v1203_v29 = vld [vmem:[#allocation11 + $0x48] sm:$0xff] }
  0x78   :  { %2021 = vmatprep.subr.bf16.mxu1 %v2369_v0  ;;  %s1477_s4 = sld [smem:[#allocation5 + $0x34]]  ;;  %s1478_s11 = sld [smem:[#allocation5 + $0x35]] }
  0x79   :  { %s1479_s12 = sld [smem:[#allocation5 + $0x36]]  ;;  %s2677_s13 = sld [smem:[#allocation5 + $0x37]] }
  0x7a   :  { %s321_s14 = scalar_lea.vmem [#allocation6], %s1473_s29  ;;  %s326_s15 = scalar_lea.vmem [#allocation6], %s1474_s30 }
  0x7b   :  { %2023 = vmatpush3.bf16.msra.mxu1 %v2528_v27  ;;  %v792_v38 = vld [vmem:[#allocation2 + $0x20] sm:$0xff]  ;;  %v322_v57 = vld [vmem:[%s321_s14] sm:$0x1]  ;;  %s1481_s22 = sld [smem:[#allocation5 + $0x38]] }
  0x7c   :  { %2024 = vmatprep.subr.bf16.mxu1 %v2369_v0  ;;  %323 = vst [vmem:[#allocation2 + $0x30] sm:$0x1] %v322_v57 }
  0x7d   :  { %s331_s2 = scalar_lea.vmem [#allocation6], %s1475_s9  ;;  %s336_s16 = scalar_lea.vmem [#allocation6], %s1476_s10 }
  0x7e   :  { %s341_s17 = scalar_lea.vmem [#allocation6], %s1477_s4  ;;  %s346_s19 = scalar_lea.vmem [#allocation6], %s1478_s11 }
  0x7f   :  { %2026 = vmatpush3.bf16.msra.mxu1 %v2534_v30  ;;  %v342_v2 = vld [vmem:[%s341_s17] sm:$0x1]  ;;  %s351_s20 = scalar_lea.vmem [#allocation6], %s1479_s12  ;;  %s356_s21 = scalar_lea.vmem [#allocation6], %s2677_s13 }
  0x80   :  { %2027 = vmatprep.subr.bf16.mxu1 %v2369_v0  ;;  %v347_v3 = vld [vmem:[%s346_s19] sm:$0x1]  ;;  %343 = vst [vmem:[#allocation2 + $0x34] sm:$0x1] %v342_v2 }
  0x81   :  { %348 = vst [vmem:[#allocation2 + $0x35] sm:$0x1] %v347_v3  ;;  %v352_v6 = vld [vmem:[%s351_s20] sm:$0x1] }
  0x82   :  { %v357_v8 = vld [vmem:[%s356_s21] sm:$0x1]  ;;  %353 = vst [vmem:[#allocation2 + $0x36] sm:$0x1] %v352_v6 }
  0x83   :  { %2029 = vmatpush3.bf16.msra.mxu1 %v2540_v33  ;;  %358 = vst [vmem:[#allocation2 + $0x37] sm:$0x1] %v357_v8 }
  0x84   :  { %2054 = vmatprep.subr.bf16.mxu1 %v2369_v0 }
 0x139   :  { %v483_v44 = vpop.f32.mrb[0].mxu1 }
 0x13a   :  { %v487_v46 = vadd.f32 %v483_v44, %v400_v43  ;;  %v1692_v47 = vpop.f32.mrb[1].mxu1  ;;  %v1194_v44 = vld [vmem:[#allocation11] sm:$0xff] }
 0x13c   :  { %v495_v48 = vadd.f32 %v2573_v45, %v487_v46  ;;  %v1195_v46 = vld [vmem:[#allocation11 + $0x8] sm:$0xff] }
 0x13d   :  { %v2673_v47 = vpack.c.bf16 %v1195_v46, %v1194_v44 }
 0x13e   :  { %2217 = vtanh.f32 %v495_v48  ;;  %v1087_v48 = vld [vmem:[#allocation9] sm:$0xff] }
 0x13f   :  { %v2151_v52 = vpack.c.bf16 %v1088_v50, %v1087_v48 }
 0x148   :  { %v2576_v49 = vpop.eup %2217 }
 0x149   :  { %497 = vst [vmem:[#allocation2] sm:$0xff] %v2576_v49  ;;  %1726 = vmatmul.mubr.f32.vlgmr.msra.gmra.mrb[2].mxu1 %v2576_v49 }
 0x14a   :  { %2056 = vmatpush3.bf16.msra.mxu1 %v2497_v5  ;;  %1795 = vmatprep.mubr.msk.f32.mxu1 %vm2370_vm0, %v2371_v1 }
 0x14b   :  { %2057 = vmatprep.subr.bf16.mxu1 %v2369_v0 }
 0x14e   :  { %2059 = vmatpush3.bf16.msra.mxu1 %v2500_v7 }
 0x14f   :  { %2060 = vmatprep.subr.bf16.mxu1 %v2369_v0 }
 0x152   :  { %2062 = vmatpush3.bf16.msra.mxu1 %v2506_v14 }
 0x153   :  { %2063 = vmatprep.subr.bf16.mxu1 %v2369_v0 }
 0x156   :  { %2065 = vmatpush3.bf16.msra.mxu1 %v2516_v21 }
 0x157   :  { %2066 = vmatprep.subr.bf16.mxu1 %v2369_v0 }
 0x15a   :  { %2068 = vmatpush3.bf16.msra.mxu1 %v2522_v24 }
 0x15b   :  { %2069 = vmatprep.subr.bf16.mxu1 %v2369_v0 }
 0x15e   :  { %2071 = vmatpush3.bf16.msra.mxu1 %v2528_v27 }
 0x15f   :  { %2072 = vmatprep.subr.bf16.mxu1 %v2369_v0 }
 0x162   :  { %2074 = vmatpush3.bf16.msra.mxu1 %v2534_v30 }
 0x163   :  { %2075 = vmatprep.subr.bf16.mxu1 %v2369_v0 }
 0x166   :  { %2077 = vmatpush3.bf16.msra.mxu1 %v2540_v33 }
 0x167   :  { %2102 = vmatprep.subr.bf16.mxu1 %v2369_v0 }
 0x21c   :  { %v581_v59 = vpop.f32.mrb[2].mxu1 }
 0x21d   :  { %v585_v60 = vadd.f32 %v581_v59, %v498_v58  ;;  %v1727_v61 = vpop.f32.mrb[3].mxu1  ;;  %v1093_v58 = vld [vmem:[#allocation9 + $0x30] sm:$0xff]  ;;  %v1094_v59 = vld [vmem:[#allocation9 + $0x38] sm:$0xff] }
 0x21e   :  { %v332_v61 = vld [vmem:[%s331_s2] sm:$0x1]  ;;  %v2160_v4 = vpack.c.bf16 %v1094_v59, %v1093_v58 }
 0x21f   :  { %v593_v62 = vadd.f32 %v2573_v45, %v585_v60  ;;  %v327_v60 = vld [vmem:[%s326_s15] sm:$0x1]  ;;  %333 = vst [vmem:[#allocation2 + $0x32] sm:$0x1] %v332_v61 }
 0x220   :  { %328 = vst [vmem:[#allocation2 + $0x31] sm:$0x1] %v327_v60  ;;  %v1497_v58 = vld [vmem:[%s2731_s5] ss:$0 sm:$0xff] }
 0x221   :  { %2219 = vtanh.f32 %v593_v62  ;;  %v337_v62 = vld [vmem:[%s336_s16] sm:$0x1] }
 0x222   :  { %338 = vst [vmem:[#allocation2 + $0x33] sm:$0x1] %v337_v62 }
 0x22b   :  { %v2599_v63 = vpop.eup %2219 }
 0x22c   :  { %595 = vst [vmem:[#allocation2 + $0x8] sm:$0xff] %v2599_v63  ;;  %1761 = vmatmul.mubr.f32.vlgmr.msra.gmra.mrb[0].mxu0 %v2599_v63 }
 0x22d   :  { %2080 = vmatpush3.bf16.msra.mxu0 %v2497_v5  ;;  %1830 = vmatprep.mubr.msk.f32.mxu0 %vm2370_vm0, %v2371_v1 }
 0x22e   :  { %2081 = vmatprep.subr.bf16.mxu0 %v2369_v0 }
 0x231   :  { %2083 = vmatpush3.bf16.msra.mxu0 %v2500_v7 }
 0x232   :  { %2084 = vmatprep.subr.bf16.mxu0 %v2369_v0 }
 0x235   :  { %2086 = vmatpush3.bf16.msra.mxu0 %v2506_v14 }
 0x236   :  { %2087 = vmatprep.subr.bf16.mxu0 %v2369_v0 }
 0x239   :  { %2089 = vmatpush3.bf16.msra.mxu0 %v2516_v21 }
 0x23a   :  { %2090 = vmatprep.subr.bf16.mxu0 %v2369_v0 }
 0x23d   :  { %2092 = vmatpush3.bf16.msra.mxu0 %v2522_v24 }
 0x23e   :  { %2093 = vmatprep.subr.bf16.mxu0 %v2369_v0 }
 0x241   :  { %2095 = vmatpush3.bf16.msra.mxu0 %v2528_v27 }
 0x242   :  { %2096 = vmatprep.subr.bf16.mxu0 %v2369_v0 }
 0x245   :  { %2098 = vmatpush3.bf16.msra.mxu0 %v2534_v30 }
 0x246   :  { %2099 = vmatprep.subr.bf16.mxu0 %v2369_v0 }
 0x249   :  { %2101 = vmatpush3.bf16.msra.mxu0 %v2540_v33 }
 0x24a   :  { %2126 = vmatprep.subr.bf16.mxu0 %v2369_v0 }
 0x2ff   :  { %v679_v13 = vpop.f32.mrb[0].mxu0 }
 0x300   :  { %v683_v15 = vadd.f32 %v679_v13, %v596_v12  ;;  %v1762_v16 = vpop.f32.mrb[1].mxu0 }
 0x301   :  { %v1197_v16 = vld [vmem:[#allocation11 + $0x18] sm:$0xff] }
 0x302   :  { %v691_v17 = vadd.f32 %v2573_v45, %v683_v15  ;;  %v1196_v15 = vld [vmem:[#allocation11 + $0x10] sm:$0xff] }
 0x304   :  { %2221 = vtanh.f32 %v691_v17  ;;  %v2178_v17 = vpack.c.bf16 %v1197_v16, %v1196_v15 }
 0x30e   :  { %v2622_v18 = vpop.eup %2221 }
 0x30f   :  { %693 = vst [vmem:[#allocation2 + $0x10] sm:$0xff] %v2622_v18  ;;  %1796 = vmatmul.mubr.f32.vlgmr.msra.gmra.mrb[4].mxu1 %v2622_v18 }
 0x310   :  { %2104 = vmatpush3.bf16.msra.mxu1 %v2497_v5  ;;  %1865 = vmatprep.mubr.msk.f32.mxu1 %vm2370_vm0, %v2371_v1 }
 0x311   :  { %2105 = vmatprep.subr.bf16.mxu1 %v2369_v0 }
 0x314   :  { %2107 = vmatpush3.bf16.msra.mxu1 %v2500_v7 }
 0x315   :  { %2108 = vmatprep.subr.bf16.mxu1 %v2369_v0 }
 0x318   :  { %2110 = vmatpush3.bf16.msra.mxu1 %v2506_v14 }
 0x319   :  { %2111 = vmatprep.subr.bf16.mxu1 %v2369_v0 }
 0x31c   :  { %2113 = vmatpush3.bf16.msra.mxu1 %v2516_v21 }
 0x31d   :  { %2114 = vmatprep.subr.bf16.mxu1 %v2369_v0 }
 0x320   :  { %2116 = vmatpush3.bf16.msra.mxu1 %v2522_v24 }
 0x321   :  { %2117 = vmatprep.subr.bf16.mxu1 %v2369_v0 }
 0x324   :  { %2119 = vmatpush3.bf16.msra.mxu1 %v2528_v27 }
 0x325   :  { %2120 = vmatprep.subr.bf16.mxu1 %v2369_v0 }
 0x328   :  { %2122 = vmatpush3.bf16.msra.mxu1 %v2534_v30 }
 0x329   :  { %2123 = vmatprep.subr.bf16.mxu1 %v2369_v0 }
 0x32c   :  { %2125 = vmatpush3.bf16.msra.mxu1 %v2540_v33 }
 0x32d   :  { %2150 = vmatprep.subr.bf16.mxu1 %v2369_v0 }
 0x3e2   :  { %v777_v32 = vpop.f32.mrb[4].mxu1 }
 0x3e3   :  { %v781_v34 = vadd.f32 %v777_v32, %v694_v31  ;;  %v1797_v35 = vpop.f32.mrb[5].mxu1  ;;  %v2190_v31 = vpack.c.bf16 %v1203_v29, %v1202_v28  ;;  %v1204_v32 = vld [vmem:[#allocation11 + $0x50] sm:$0xff] }
 0x3e5   :  { %v789_v36 = vadd.f32 %v2573_v45, %v781_v34  ;;  %v1205_v34 = vld [vmem:[#allocation11 + $0x58] sm:$0xff] }
 0x3e6   :  { %v2194_v35 = vpack.c.bf16 %v1205_v34, %v1204_v32 }
 0x3e7   :  { %2223 = vtanh.f32 %v789_v36  ;;  %v1206_v36 = vld [vmem:[#allocation11 + $0x60] sm:$0xff] }
 0x3f1   :  { %v2645_v37 = vpop.eup %2223 }
 0x3f2   :  { %791 = vst [vmem:[#allocation2 + $0x18] sm:$0xff] %v2645_v37  ;;  %1831 = vmatmul.mubr.f32.vlgmr.msra.gmra.mrb[2].mxu0 %v2645_v37 }
 0x3f3   :  { %2128 = vmatpush3.bf16.msra.mxu0 %v2497_v5  ;;  %1900 = vmatprep.mubr.msk.f32.mxu0 %vm2370_vm0, %v2371_v1  ;;  %v282_v5 = vld [vmem:[%s281_s0] sm:$0x1]  ;;  %s1482_s0 = sld [smem:[#allocation5 + $0x39]] }
 0x3f4   :  { %2129 = vmatprep.subr.bf16.mxu0 %v2369_v0  ;;  %283 = vst [vmem:[#allocation2 + $0x28] sm:$0x1] %v282_v5  ;;  %v1207_v5 = vld [vmem:[#allocation11 + $0x68] sm:$0xff] }
 0x3f7   :  { %2131 = vmatpush3.bf16.msra.mxu0 %v2500_v7  ;;  %v287_v7 = vld [vmem:[%s286_s6] sm:$0x1]  ;;  %s1483_s6 = sld [smem:[#allocation5 + $0x3a]] }
 0x3f8   :  { %2132 = vmatprep.subr.bf16.mxu0 %v2369_v0  ;;  %288 = vst [vmem:[#allocation2 + $0x29] sm:$0x1] %v287_v7  ;;  %v1208_v7 = vld [vmem:[#allocation11 + $0x70] sm:$0xff] }
 0x3f9   :  { %s366_s29 = scalar_lea.vmem [#allocation6], %s1482_s0 }
 0x3fa   :  { %v367_v44 = vld [vmem:[%s366_s29] sm:$0x1] }
 0x3fb   :  { %2134 = vmatpush3.bf16.msra.mxu0 %v2506_v14  ;;  %v292_v14 = vld [vmem:[%s291_s23] sm:$0x1]  ;;  %s1484_s23 = sld [smem:[#allocation5 + $0x3b]]  ;;  %368 = vst [vmem:[#allocation2 + $0x39] sm:$0x1] %v367_v44 }
 0x3fc   :  { %2135 = vmatprep.subr.bf16.mxu0 %v2369_v0  ;;  %293 = vst [vmem:[#allocation2 + $0x2a] sm:$0x1] %v292_v14  ;;  %v1209_v14 = vld [vmem:[#allocation11 + $0x78] sm:$0xff] }
 0x3fd   :  { %s371_s30 = scalar_lea.vmem [#allocation6], %s1483_s6 }
 0x3ff   :  { %2137 = vmatpush3.bf16.msra.mxu0 %v2516_v21  ;;  %v297_v21 = vld [vmem:[%s296_s24] sm:$0x1]  ;;  %s1485_s24 = sld [smem:[#allocation5 + $0x3c]] }
 0x400   :  { %2138 = vmatprep.subr.bf16.mxu0 %v2369_v0  ;;  %298 = vst [vmem:[#allocation2 + $0x2b] sm:$0x1] %v297_v21  ;;  %v2202_v21 = vpack.c.bf16 %v1209_v14, %v1208_v7 }
 0x401   :  { %s376_s9 = scalar_lea.vmem [#allocation6], %s1484_s23 }
 0x402   :  { %v377_v46 = vld [vmem:[%s376_s9] sm:$0x1] }
 0x403   :  { %2140 = vmatpush3.bf16.msra.mxu0 %v2522_v24  ;;  %v302_v24 = vld [vmem:[%s301_s25] sm:$0x1]  ;;  %s1486_s25 = sld [smem:[#allocation5 + $0x3d]]  ;;  %378 = vst [vmem:[#allocation2 + $0x3b] sm:$0x1] %v377_v46 }
 0x404   :  { %2141 = vmatprep.subr.bf16.mxu0 %v2369_v0  ;;  %303 = vst [vmem:[#allocation2 + $0x2c] sm:$0x1] %v302_v24  ;;  %v1095_v24 = vld [vmem:[#allocation9 + $0x40] sm:$0xff] }
 0x405   :  { %s381_s10 = scalar_lea.vmem [#allocation6], %s1485_s24 }
 0x407   :  { %2143 = vmatpush3.bf16.msra.mxu0 %v2528_v27  ;;  %v307_v27 = vld [vmem:[%s306_s28] sm:$0x1]  ;;  %s1487_s28 = sld [smem:[#allocation5 + $0x3e]] }
 0x408   :  { %2144 = vmatprep.subr.bf16.mxu0 %v2369_v0  ;;  %308 = vst [vmem:[#allocation2 + $0x2d] sm:$0x1] %v307_v27  ;;  %v1096_v27 = vld [vmem:[#allocation9 + $0x48] sm:$0xff] }
 0x409   :  { %s386_s4 = scalar_lea.vmem [#allocation6], %s1486_s25 }
 0x40a   :  { %v387_v48 = vld [vmem:[%s386_s4] sm:$0x1] }
 0x40b   :  { %2146 = vmatpush3.bf16.msra.mxu0 %v2534_v30  ;;  %v312_v30 = vld [vmem:[%s311_s1] sm:$0x1]  ;;  %s1488_s1 = sld [smem:[#allocation5 + $0x3f]]  ;;  %388 = vst [vmem:[#allocation2 + $0x3d] sm:$0x1] %v387_v48 }
 0x40c   :  { %2147 = vmatprep.subr.bf16.mxu0 %v2369_v0  ;;  %313 = vst [vmem:[#allocation2 + $0x2e] sm:$0x1] %v312_v30  ;;  %v2163_v30 = vpack.c.bf16 %v1096_v27, %v1095_v24 }
 0x40d   :  { %s391_s11 = scalar_lea.vmem [#allocation6], %s1487_s28 }
 0x40e   :  { %v392_v50 = vld [vmem:[%s391_s11] sm:$0x1] }
 0x40f   :  { %2149 = vmatpush3.bf16.msra.mxu0 %v2540_v33  ;;  %v317_v33 = vld [vmem:[%s316_s18] sm:$0x1]  ;;  %s361_s18 = scalar_lea.vmem [#allocation6], %s1481_s22  ;;  %393 = vst [vmem:[#allocation2 + $0x3e] sm:$0x1] %v392_v50 }
 0x410   :  { %318 = vst [vmem:[#allocation2 + $0x2f] sm:$0x1] %v317_v33  ;;  %2175 = vmatprep.subr.bf16.mxu0 %v2673_v47  ;;  %v1097_v33 = vld [vmem:[#allocation9 + $0x50] sm:$0xff] }
 0x411   :  { %s396_s12 = scalar_lea.vmem [#allocation6], %s1488_s1 }
 0x412   :  { %v397_v51 = vld [vmem:[%s396_s12] sm:$0x1] }
 0x413   :  { %398 = vst [vmem:[#allocation2 + $0x3f] sm:$0x1] %v397_v51 }
 0x417   :  { %v890_v9 = vld [vmem:[#allocation2 + $0x28] sm:$0xff] }
 0x4c5   :  { %v875_v39 = vpop.f32.mrb[2].mxu0 }
 0x4c6   :  { %v879_v40 = vadd.f32 %v875_v39, %v792_v38  ;;  %v1832_v41 = vpop.f32.mrb[3].mxu0  ;;  %v1098_v38 = vld [vmem:[#allocation9 + $0x58] sm:$0xff] }
 0x4c7   :  { %v2166_v39 = vpack.c.bf16 %v1098_v38, %v1097_v33  ;;  %v1102_v41 = vld [vmem:[#allocation9 + $0x78] sm:$0xff] }
 0x4c8   :  { %v887_v42 = vadd.f32 %v2573_v45, %v879_v40  ;;  %v1100_v40 = vld [vmem:[#allocation9 + $0x68] sm:$0xff] }
 0x4ca   :  { %2225 = vtanh.f32 %v887_v42 }
 0x4d4   :  { %v2667_v43 = vpop.eup %2225 }
 0x4d5   :  { %889 = vst [vmem:[#allocation2 + $0x20] sm:$0xff] %v2667_v43  ;;  %1866 = vmatmul.mubr.f32.vlgmr.msra.gmra.mrb[6].mxu1 %v2667_v43 }
 0x4d6   :  { %1935 = vmatprep.mubr.msk.f32.mxu1 %vm2370_vm0, %v2371_v1  ;;  %2152 = vmatpush3.bf16.msra.mxu1 %v2151_v52  ;;  %v1091_v1 = vld [vmem:[#allocation9 + $0x20] sm:$0xff]  ;;  %v988_v52 = vld [vmem:[#allocation2 + $0x30] sm:$0xff] }
 0x4d7   :  { %2153 = vmatprep.subr.bf16.mxu1 %v2369_v0  ;;  %v2157_v56 = vpack.c.bf16 %v1092_v55, %v1091_v1 }
 0x4da   :  { %2155 = vmatpush3.bf16.msra.mxu1 %v2154_v54  ;;  %v1495_v54 = vld [vmem:[%s2729_s3] ss:$0 sm:$0xff]  ;;  %s2372_s3 = smov [#allocation13]  }
 0x4db   :  { %2156 = vmatprep.subr.bf16.mxu1 %v2369_v0  ;;  %s1348_s5 = sshll.u32 %s2372_s3, 4  ;;  %s1349_s5 = int_to_ptr.vmem [resolvable:$true] %s1348_s5 }
 0x4dc   :  { %s2309_s16 = scalar_lea.vmem %s1349_s5, 128  ;;  %p2314_p0 = scmp.lt.s32.totalorder %s1349_s5, %s1349_s5 }
 0x4dd   :  { %p2310_p13 = scmp.ne.s32.totalorder %s1349_s5, %s2309_s16  ;;  %p2315_p1 = scmp.lt.s32.totalorder %s2309_s16, %s2309_s16 }
 0x4de   :  { %2158 = vmatpush3.bf16.msra.mxu1 %v2157_v56 }
 0x4df   :  { %2159 = vmatprep.subr.bf16.mxu1 %v2369_v0  ;;  %p2316_p2 = por %p2315_p1, %p2314_p0 }
 0x4e1   :  { %p2317_p3 = pnand %p2316_p2, %p2310_p13 }
 0x4e2   :  { %2161 = vmatpush3.bf16.msra.mxu1 %v2160_v4 }
 0x4e3   :  { %2162 = vmatprep.subr.bf16.mxu1 %v2369_v0 }
 0x4e6   :  { %2164 = vmatpush3.bf16.msra.mxu1 %v2163_v30 }
 0x4e7   :  { %2165 = vmatprep.subr.bf16.mxu1 %v2369_v0 }
 0x4ea   :  { %2167 = vmatpush3.bf16.msra.mxu1 %v2166_v39 }
 0x4eb   :  { %2168 = vmatprep.subr.bf16.mxu1 %v2369_v0 }
 0x5a8   :  { %v973_v10 = vpop.f32.mrb[6].mxu1 }
 0x5a9   :  { %v977_v11 = vadd.f32 %v973_v10, %v890_v9  ;;  %v1867_v12 = vpop.f32.mrb[7].mxu1 }
 0x5ab   :  { %v985_v13 = vadd.f32 %v2573_v45, %v977_v11  ;;  %v2186_v45 = vpack.c.bf16 %v1201_v26, %v1200_v25 }
 0x5ad   :  { %2227 = vtanh.f32 %v985_v13 }
 0x5b7   :  { %v2228_v19 = vpop.eup %2227 }
 0x5b8   :  { %987 = vst [vmem:[#allocation2 + $0x28] sm:$0xff] %v2228_v19  ;;  %1901 = vmatmul.mubr.f32.vlgmr.msra.gmra.mrb[4].mxu0 %v2228_v19 }
 0x5b9   :  { %2177 = vmatpush3.bf16.msra.mxu0 %v2673_v47  ;;  %1970 = vmatprep.mubr.f32.mxu0 %v2576_v49  ;;  %v2198_v49 = vpack.c.bf16 %v1207_v5, %v1206_v36  ;;  %v382_v47 = vld [vmem:[%s381_s10] sm:$0x1] }
 0x5ba   :  { %2179 = vmatprep.subr.bf16.mxu0 %v2178_v17  ;;  %383 = vst [vmem:[#allocation2 + $0x3c] sm:$0x1] %v382_v47 }
 0x5bd   :  { %2181 = vmatpush3.bf16.msra.mxu0 %v2178_v17 }
 0x5be   :  { %2183 = vmatprep.subr.bf16.mxu0 %v2182_v23 }
 0x5c1   :  { %2185 = vmatpush3.bf16.msra.mxu0 %v2182_v23 }
 0x5c2   :  { %2187 = vmatprep.subr.bf16.mxu0 %v2186_v45 }
 0x5c5   :  { %2189 = vmatpush3.bf16.msra.mxu0 %v2186_v45 }
 0x5c6   :  { %2191 = vmatprep.subr.bf16.mxu0 %v2190_v31 }
 0x5c9   :  { %2193 = vmatpush3.bf16.msra.mxu0 %v2190_v31 }
 0x5ca   :  { %2195 = vmatprep.subr.bf16.mxu0 %v2194_v35 }
 0x5cd   :  { %2197 = vmatpush3.bf16.msra.mxu0 %v2194_v35 }
 0x5ce   :  { %2199 = vmatprep.subr.bf16.mxu0 %v2198_v49 }
 0x5d1   :  { %2201 = vmatpush3.bf16.msra.mxu0 %v2198_v49 }
 0x5d2   :  { %2203 = vmatprep.subr.bf16.mxu0 %v2202_v21 }
 0x5d5   :  { %2205 = vmatpush3.bf16.msra.mxu0 %v2202_v21 }
 0x5d8   :  { %1971 = vmatmul.mubr.f32.vlgmr.msra.gmra.mrb[6].mxu0 %v2599_v63  ;;  %v1099_v63 = vld [vmem:[#allocation9 + $0x60] sm:$0xff] }
 0x5d9   :  { %1973 = vmatprep.mubr.f32.mxu0 %v2622_v18  ;;  %v2169_v18 = vpack.c.bf16 %v1100_v40, %v1099_v63 }
 0x5db   :  { %2170 = vmatpush3.bf16.msra.mxu1 %v2169_v18 }
 0x5dc   :  { %1974 = vmatmul.mubr.f32.gmra.mrb[8].mxu0 %v2645_v37  ;;  %2171 = vmatprep.subr.bf16.mxu1 %v2369_v0  ;;  %v1101_v37 = vld [vmem:[#allocation9 + $0x70] sm:$0xff]  ;;  %v372_v0 = vld [vmem:[%s371_s30] sm:$0x1] }
 0x5dd   :  { %1976 = vmatprep.mubr.f32.mxu0 %v2667_v43  ;;  %v2172_v42 = vpack.c.bf16 %v1102_v41, %v1101_v37  ;;  %v362_v43 = vld [vmem:[%s361_s18] sm:$0x1]  ;;  %373 = vst [vmem:[#allocation2 + $0x3a] sm:$0x1] %v372_v0 }
 0x5de   :  { %363 = vst [vmem:[#allocation2 + $0x38] sm:$0x1] %v362_v43 }
 0x5df   :  { %2173 = vmatpush3.bf16.msra.mxu1 %v2172_v42 }
 0x5e0   :  { %1977 = vmatmul.mubr.f32.gmra.mrb[10].mxu0 %v2228_v19 }
 0x5e5   :  { %v1086_v12 = vld [vmem:[#allocation2 + $0x38] sm:$0xff] }
 0x68b   :  { %v1071_v53 = vpop.f32.mrb[4].mxu0 }
 0x68c   :  { %v1075_v1 = vadd.f32 %v1071_v53, %v988_v52  ;;  %v1902_v55 = vpop.f32.mrb[5].mxu0 }
 0x68e   :  { %v1083_v56 = vadd.f32 %v1495_v54, %v1075_v1 }
 0x690   :  { %2229 = vtanh.f32 %v1083_v56 }
 0x69a   :  { %v2230_v57 = vpop.eup %2229 }
 0x69b   :  { %1085 = vst [vmem:[#allocation2 + $0x30] sm:$0xff] %v2230_v57  ;;  %1936 = vmatmul.mubr.f32.vlgmr.msra.gmra.mrb[8].mxu1 %v2230_v57  ;;  %1979 = vmatprep.mubr.f32.mxu0 %v2230_v57 }
 0x6ab   :  { %v1972_v59 = vpop.f32.mrb[6].mxu0 }
 0x6ac   :  { %v1289_v60 = vadd.f32 %v1972_v59, %v1497_v58  ;;  %v1283_v61 = vpop.f32.mrb[7].mxu0 }
 0x6ad   :  { %v1284_v62 = vadd.f32 %v1497_v58, %v1283_v61 }
 0x6ae   :  { %1323 = vst [vmem:[#allocation12 + $0x8] sm:$0xff] %v1289_v60 }
 0x6af   :  { %1322 = vst [vmem:[#allocation12] sm:$0xff] %v1284_v62  ;;  %v1975_v2 = vpop.f32.mrb[8].mxu0 }
 0x6b0   :  { %v1299_v3 = vadd.f32 %v1975_v2, %v1497_v58  ;;  %v1293_v4 = vpop.f32.mrb[9].mxu0 }
 0x6b1   :  { %v1294_v6 = vadd.f32 %v1497_v58, %v1293_v4 }
 0x6b2   :  { %1325 = vst [vmem:[#allocation12 + $0x18] sm:$0xff] %v1299_v3 }
 0x6b3   :  { %1324 = vst [vmem:[#allocation12 + $0x10] sm:$0xff] %v1294_v6  ;;  %v1978_v8 = vpop.f32.mrb[10].mxu0 }
 0x6b4   :  { %v1309_v9 = vadd.f32 %v1978_v8, %v1497_v58  ;;  %v1303_v10 = vpop.f32.mrb[11].mxu0 }
 0x6b5   :  { %v1304_v11 = vadd.f32 %v1497_v58, %v1303_v10 }
 0x6b6   :  { %1327 = vst [vmem:[#allocation12 + $0x28] sm:$0xff] %v1309_v9 }
 0x6b7   :  { %1326 = vst [vmem:[#allocation12 + $0x20] sm:$0xff] %v1304_v11 }
 0x76e   :  { %v1169_v13 = vpop.f32.mrb[8].mxu1 }
 0x76f   :  { %v1173_v15 = vadd.f32 %v1169_v13, %v1086_v12  ;;  %v1937_v16 = vpop.f32.mrb[9].mxu1 }
 0x771   :  { %v1181_v17 = vadd.f32 %v1495_v54, %v1173_v15 }
 0x773   :  { %2231 = vtanh.f32 %v1181_v17 }
 0x77d   :  { %v2232_v19 = vpop.eup %2231 }
 0x77e   :  { %1183 = vst [vmem:[#allocation2 + $0x38] sm:$0xff] %v2232_v19  ;;  %1185 = vst [vmem:[#allocation13] sm:$0xff] %v2232_v19  ;;  %1980 = vmatmul.mubr.f32.gmra.mrb[12].mxu0 %v2232_v19 }
 0x77f   :  { %2320 = shalt.err (!%p2317_p3)
}
 0x780   :  { %s2321_s20 = scalar_lea.hbm %s2734_s8, 128 }
 0x781   :  { %p2322_p4 = scmp.ne.s32.totalorder %s2734_s8, %s2321_s20  ;;  %p2325_p5 = scmp.lt.u32.totalorder %s2321_s20, %s2734_s8 }
 0x783   :  { %p2327_p6 = pnand %p2325_p5, %p2322_p4 }
 0x785   :  { %2330 = shalt.err (!%p2327_p6)
}
 0x786   :  { %1351 = dma.vmem_to_hbm [thread:$0]  %s1349_s5, 128, %s2734_s8, [#allocation14]  }
 0x787   :  { %s2373_s25 = smov [#allocation12]  }
 0x788   :  { %s1335_s28 = sshll.u32 %s2373_s25, 4  ;;  %s1336_s28 = int_to_ptr.vmem [resolvable:$true] %s1335_s28 }
 0x789   :  { %s2331_s1 = scalar_lea.vmem %s1336_s28, 1024  ;;  %p2336_p8 = scmp.lt.s32.totalorder %s1336_s28, %s1336_s28 }
 0x78a   :  { %p2332_p7 = scmp.ne.s32.totalorder %s1336_s28, %s2331_s1  ;;  %p2337_p9 = scmp.lt.s32.totalorder %s2331_s1, %s2331_s1 }
 0x78c   :  { %p2338_p10 = por %p2337_p9, %p2336_p8 }
 0x78e   :  { %p2339_p11 = pnand %p2338_p10, %p2332_p7 }
 0x851   :  { %v1981_v20 = vpop.f32.mrb[12].mxu0 }
 0x852   :  { %v1319_v22 = vadd.f32 %v1981_v20, %v1497_v58  ;;  %v1313_v23 = vpop.f32.mrb[13].mxu0 }
 0x853   :  { %v1314_v25 = vadd.f32 %v1497_v58, %v1313_v23 }
 0x854   :  { %1329 = vst [vmem:[#allocation12 + $0x38] sm:$0xff] %v1319_v22 }
 0x855   :  { %1328 = vst [vmem:[#allocation12 + $0x30] sm:$0xff] %v1314_v25 }
 0x856   :  { %2342 = shalt.err (!%p2339_p11)
}
 0x857   :  { %s2343_s8 = scalar_lea.hbm %s2733_s7, 1024 }
 0x858   :  { %p2344_p12 = scmp.ne.s32.totalorder %s2733_s7, %s2343_s8  ;;  %p2347_p13 = scmp.lt.u32.totalorder %s2343_s8, %s2733_s7 }
 0x85a   :  { %p2349_p0 = pnand %p2347_p13, %p2344_p12 }
 0x85c   :  { %2352 = shalt.err (!%p2349_p0)
}
 0x85d   :  { %1341 = dma.vmem_to_hbm [thread:$0]  %s1336_s28, 1024, %s2733_s7, [#allocation8], %s2366_s26, %s2366_s26, %s2367_s27  }
 0x85e   :  { %2359 = dma.done.wait [#allocation8], 1024  }
 0x85f   :  { %2360 = vsyncadd [#allocation8], 4294966272 }
 0x860   :  { %2361 = dma.done.wait [#allocation14], 128  }
 0x861   :  { %2362 = vsyncadd [#allocation14], 4294967168 }
 0x862   :  { %1358 = vsyncpa [#allocation7], 1 }
 0x863   :  { %1359 = vsyncpa [#allocation10], 1 }
 0x864   :  { %1360 = vsyncpa [#allocation8], 1 }
 0x865   :  { %1361 = vsyncpa [#allocation14], 1 }

</bundles_post_ra>
